<compile_context>
chip_gen: v7x
topology: tpu7x:2x2x1
jax: 0.10.0
libtpu: 0.0.40
codegen_flags: <defaults>
</compile_context>

<pallas_src>
import numpy as np
import jax
import jax.numpy as jnp
from jax import lax
from jax.experimental import pallas as pl
from jax.experimental.pallas import tpu as pltpu

IMG_CHANNELS = 1
IMG_SIZE = 16          # small version of the module (default 64); same architecture loop
NUM_CLASSES = 10
BATCH = 2
EPS = 1e-5
NEG_SLOPE = 0.2
KSIZE = 4
STRIDE = 2
PAD = 1
TAPS = KSIZE * KSIZE


# ---------------------------------------------------------------------------
# Architecture (mirrors the PyTorch __init__ while-loop)
# ---------------------------------------------------------------------------
def _arch_dims():
    """Returns ([(cin, cout, h_in, h_out), ...], final_channels, final_spatial)."""
    dims = []
    in_c = IMG_CHANNELS + 1
    out_c = 64
    size = IMG_SIZE
    while size > 4:
        dims.append((in_c, out_c, size, size // 2))
        in_c = out_c
        out_c *= 2
        size //= 2
    return dims, in_c, size


# ---------------------------------------------------------------------------
# Fused Pallas kernel
# ---------------------------------------------------------------------------
def make_fused_kernel(batch, dims, hw_last, c_last):
    n_layers = len(dims)
    n_deferred = n_layers - 1          # layers whose weights/sel are DMAed manually

    def kernel(*refs):
        # --- unpack (inputs..., output, scratch...) ---
        idx = 0
        p0_ref = refs[idx]; idx += 1                     # [M0, 16*Cin0] layer-0 patches (VMEM)
        w_refs, bgb_refs = [], []
        for _ in range(n_layers):
            w_refs.append(refs[idx]); idx += 1           # l==0: VMEM [16*Cin,Cout]; l>=1: HBM(ANY)
            bgb_refs.append(refs[idx]); idx += 1         # [3, Cout] = (bias, gamma, beta) (VMEM)
        sel_hbm_refs = []
        for _ in range(n_deferred):
            sel_hbm_refs.append(refs[idx]); idx += 1     # [16*h_out^2, h_in^2] bf16 (HBM/ANY)
        fcw_ref = refs[idx]; idx += 1                    # [hw_last, c_last] (NHWC order, VMEM)
        fcb_ref = refs[idx]; idx += 1                    # [1, 1]
        o_ref = refs[idx]; idx += 1                      # [B, 1]
        w_vmem, sel_vmem = [], []
        for _ in range(n_deferred):
            w_vmem.append(refs[idx]); idx += 1           # VMEM scratch for layer>=1 weights
            sel_vmem.append(refs[idx]); idx += 1         # VMEM scratch for sel (bf16)
        sem_ref = refs[idx]                              # DMA semaphores, shape (2*n_deferred,)

        # Kick off the big deferred DMAs so they overlap with layer-0 compute.
        copies = []
        for l in range(n_deferred):
            cw = pltpu.make_async_copy(w_refs[l + 1], w_vmem[l], sem_ref.at[2 * l])
            cs = pltpu.make_async_copy(sel_hbm_refs[l], sel_vmem[l], sem_ref.at[2 * l + 1])
            cw.start()
            cs.start()
            copies.append((cw, cs))

        y = None
        for l, (cin, cout, h_in, h_out) in enumerate(dims):
            h_in2 = h_in * h_in
            h_out2 = h_out * h_out

            if l == 0:
                acc = jnp.dot(p0_ref[...], w_refs[0][...],
                              preferred_element_type=jnp.float32)
            else:
                # Wait only now — the HBM->VMEM copies ran under layer l-1's compute.
                copies[l - 1][0].wait()
                copies[l - 1][1].wait()
                # Batch-independent, in-VMEM im2col: one 0/1 selection matmul per
                # batch image (zero rows implement the padding).  sel is exact in
                # bf16 (0/1 values), cast back to f32 so the gather stays exact.
                sel = sel_vmem[l - 1][...].astype(jnp.float32)      # [16*h_out2, h_in2]
                g_list = [
                    jnp.dot(sel, y[b * h_in2:(b + 1) * h_in2, :],
                            preferred_element_type=jnp.float32)     # [16*h_out2, cin]
                    for b in range(batch)
                ]
                # Per-tap matmuls on contiguous weight slabs, pairwise tree-reduced
                # (critical path 4 adds instead of 15).
                partials = []
                for t in range(TAPS):
                    if batch > 1:
                        rows = jnp.concatenate(
                            [g[t * h_out2:(t + 1) * h_out2, :] for g in g_list],
                            axis=0)                                  # [B*h_out2, cin]
                    else:
                        rows = g_list[0][t * h_out2:(t + 1) * h_out2, :]
                    partials.append(
                        jnp.dot(rows, w_vmem[l - 1][t * cin:(t + 1) * cin, :],
                                preferred_element_type=jnp.float32))
                while len(partials) > 1:
                    nxt = [partials[i] + partials[i + 1]
                           for i in range(0, len(partials) - 1, 2)]
                    if len(partials) % 2:
                        nxt.append(partials[-1])
                    partials = nxt
                acc = partials[0]                                    # [B*h_out2, cout]

            bgb = bgb_refs[l][...]                      # [3, cout]
            yb = acc + bgb[0:1, :]                      # conv bias
            # LeakyReLU(0.2) BEFORE BatchNorm, exactly as in the module.
            ya = jnp.where(yb > 0, yb, NEG_SLOPE * yb)
            # BatchNorm2d (training mode, biased batch stats over rows == (N,H,W)),
            # two-pass in f32.
            mean = jnp.mean(ya, axis=0, keepdims=True)
            centered = ya - mean
            var = jnp.mean(centered * centered, axis=0, keepdims=True)
            y = centered * (bgb[1:2, :] * lax.rsqrt(var + EPS)) + bgb[2:3, :]

        # Flatten + Linear(->1) + Sigmoid as a VPU multiply + reductions (no N=1
        # MXU matmul / masked vst); FC weight was pre-permuted to NHWC order.
        y3 = y.reshape(batch, hw_last, c_last)
        prod = y3 * fcw_ref[...]
        s = jnp.sum(prod, axis=2)                       # [B, hw_last]
        s = jnp.sum(s, axis=1, keepdims=True)           # [B, 1]
        o_ref[...] = 1.0 / (1.0 + jnp.exp(-(s + fcb_ref[...])))

    return kernel


def _full_spec(shape):
    zeros = (0,) * len(shape)
    return pl.BlockSpec(shape, lambda i, _z=zeros: _z)


def fused_forward(patches0, prepared, batch):
    dims, c_last, side_last = _arch_dims()
    hw_last = side_last * side_last
    n_layers = len(dims)
    n_deferred = n_layers - 1
    assert n_deferred >= 1

    operands = [patches0]
    in_specs = [_full_spec(patches0.shape)]
    for l in range(n_layers):
        operands.append(prepared["w"][l])
        if l == 0:
            in_specs.append(_full_spec(prepared["w"][l].shape))
        else:
            in_specs.append(pl.BlockSpec(memory_space=pl.ANY))   # deferred manual DMA
        operands.append(prepared["bgb"][l])
        in_specs.append(_full_spec(prepared["bgb"][l].shape))
    for sel in prepared["sel"]:
        operands.append(sel)
        in_specs.append(pl.BlockSpec(memory_space=pl.ANY))       # deferred manual DMA
    operands.append(prepared["fcw"]); in_specs.append(_full_spec(prepared["fcw"].shape))
    operands.append(prepared["fcb"]); in_specs.append(_full_spec(prepared["fcb"].shape))

    scratch_shapes = []
    for l in range(1, n_layers):
        scratch_shapes.append(pltpu.VMEM(prepared["w"][l].shape, jnp.float32))
        scratch_shapes.append(pltpu.VMEM(prepared["sel"][l - 1].shape, jnp.bfloat16))
    scratch_shapes.append(pltpu.SemaphoreType.DMA((2 * n_deferred,)))

    kernel = make_fused_kernel(batch, dims, hw_last, c_last)
    return pl.pallas_call(
        kernel,
        out_shape=jax.ShapeDtypeStruct((batch, 1), jnp.float32),
        grid=(1,),
        in_specs=in_specs,
        out_specs=_full_spec((batch, 1)),
        scratch_shapes=scratch_shapes,
        compiler_params=pltpu.CompilerParams(dimension_semantics=("arbitrary",)),
    )(*operands)


# ---------------------------------------------------------------------------
# XLA glue: layer-0 im2col only (tiny), everything else is in the kernel
# ---------------------------------------------------------------------------
def im2col_nhwc(x, k=KSIZE, s=STRIDE, p=PAD):
    B, H, W, C = x.shape
    xp = jnp.pad(x, ((0, 0), (p, p), (p, p), (0, 0)))
    Ho = (H + 2 * p - k) // s + 1
    Wo = (W + 2 * p - k) // s + 1
    cols = []
    for kh in range(k):
        for kw in range(k):
            cols.append(xp[:, kh:kh + s * Ho:s, kw:kw + s * Wo:s, :])  # [B,Ho,Wo,C]
    pat = jnp.stack(cols, axis=3)                                      # [B,Ho,Wo,k*k,C]
    return pat.reshape(B * Ho * Wo, k * k * C)


# ---------------------------------------------------------------------------
# Parameters (deterministic, synthetic; mirrors the PyTorch __init__ shapes)
# ---------------------------------------------------------------------------
def init_params(key):
    dims, c_last, side_last = _arch_dims()
    params = {}
    key, k_emb = jax.random.split(key)
    params["embed"] = 0.1 * jax.random.normal(
        k_emb, (NUM_CLASSES, IMG_SIZE * IMG_SIZE), jnp.float32)

    conv_params = []
    for (cin, cout, _h_in, _h_out) in dims:
        key, kw_, kb_ = jax.random.split(key, 3)
        w = 0.1 * jax.random.normal(kw_, (cout, cin, KSIZE, KSIZE), jnp.float32)  # OIHW
        b = 0.1 * jax.random.normal(kb_, (cout,), jnp.float32)
        gamma = jnp.ones((cout,), jnp.float32)   # PyTorch BN default weight
        beta = jnp.zeros((cout,), jnp.float32)   # PyTorch BN default bias
        conv_params.append((w, b, gamma, beta))
    params["conv"] = conv_params

    key, kfw, kfb = jax.random.split(key, 3)
    fc_in = c_last * side_last * side_last
    params["fc_w"] = 0.1 * jax.random.normal(kfw, (fc_in, 1), jnp.float32)
    params["fc_b"] = 0.1 * jax.random.normal(kfb, (1,), jnp.float32)
    return params


def _build_sel(h_in, h_out):
    """Batch-independent 0/1 im2col selection matrix for a k=4,s=2,p=1 conv.

    Rows are ordered (tap, oh, ow); all-zero rows implement the padding.
    Stored as bf16 (0/1 is exact) to halve the HBM->VMEM DMA.
    """
    sel = np.zeros((TAPS * h_out * h_out, h_in * h_in), np.float32)
    for t in range(TAPS):
        kh, kw = divmod(t, KSIZE)
        for oh in range(h_out):
            for ow in range(h_out):
                ih = STRIDE * oh + kh - PAD
                iw = STRIDE * ow + kw - PAD
                if 0 <= ih < h_in and 0 <= iw < h_in:
                    sel[t * h_out * h_out + oh * h_out + ow, ih * h_in + iw] = 1.0
    return jnp.asarray(sel).astype(jnp.bfloat16)


def prepare_pallas_params(params):
    """Hoist all layout work out of the forward pass (done once)."""
    dims, c_last, side_last = _arch_dims()
    prepared = {"embed": params["embed"]}
    w_list, bgb_list, sel_list = [], [], []
    for l, ((w, b, gamma, beta), (cin, cout, h_in, h_out)) in enumerate(
            zip(params["conv"], dims)):
        # OIHW -> [(kh*4+kw)*cin + c, cout], matching the patch feature ordering.
        w_mat = jnp.transpose(w, (2, 3, 1, 0)).reshape(TAPS * cin, cout)
        w_list.append(w_mat)
        bgb_list.append(jnp.stack([b, gamma, beta], axis=0))     # packed [3, cout]
        if l > 0:
            sel_list.append(_build_sel(h_in, h_out))             # batch-independent
    # FC weight re-indexed from NCHW-flatten order (c*HW + hw) to NHWC order [hw, c].
    hw_last = side_last * side_last
    fcw = params["fc_w"].reshape(c_last, hw_last).T              # [hw_last, c_last]
    prepared.update({"w": w_list, "bgb": bgb_list, "sel": sel_list,
                     "fcw": fcw, "fcb": params["fc_b"].reshape(1, 1)})
    return prepared


# ---------------------------------------------------------------------------
# Forward pass (Pallas) and pure-JAX reference
# ---------------------------------------------------------------------------
@jax.jit
def discriminator_pallas(img, labels, prepared):
    B = img.shape[0]
    emb = prepared["embed"][labels].reshape(B, IMG_SIZE, IMG_SIZE, 1)
    if IMG_CHANNELS == 1:
        img_nhwc = img.reshape(B, IMG_SIZE, IMG_SIZE, 1)   # NCHW->NHWC is free when C==1
    else:
        img_nhwc = jnp.transpose(img, (0, 2, 3, 1))
    x = jnp.concatenate([img_nhwc, emb], axis=-1)          # channel order (img, label), as torch.cat
    patches0 = im2col_nhwc(x)                              # tiny layer-0 im2col stays in XLA
    return fused_forward(patches0, prepared, B)


def discriminator_ref(img, labels, params):
    B = img.shape[0]
    emb = params["embed"][labels].reshape(B, 1, IMG_SIZE, IMG_SIZE)
    x = jnp.concatenate([img, emb], axis=1)
    for (w, b, gamma, beta) in params["conv"]:
        x = lax.conv_general_dilated(
            x, w, window_strides=(2, 2), padding=((1, 1), (1, 1)),
            dimension_numbers=("NCHW", "OIHW", "NCHW"))
        x = x + b[None, :, None, None]
        x = jnp.where(x > 0, x, NEG_SLOPE * x)
        mean = jnp.mean(x, axis=(0, 2, 3), keepdims=True)
        var = jnp.mean((x - mean) ** 2, axis=(0, 2, 3), keepdims=True)
        x = (gamma[None, :, None, None] * (x - mean) * lax.rsqrt(var + EPS)
             + beta[None, :, None, None])
    flat = x.reshape(B, -1)
    y = flat @ params["fc_w"] + params["fc_b"]
    return 1.0 / (1.0 + jnp.exp(-y))


if __name__ == "__main__":
    key = jax.random.PRNGKey(0)
    k_img, k_lab, k_par = jax.random.split(key, 3)

    img = jax.random.normal(k_img, (BATCH, IMG_CHANNELS, IMG_SIZE, IMG_SIZE), jnp.float32)
    labels = jax.random.randint(k_lab, (BATCH,), 0, NUM_CLASSES)
    params = init_params(k_par)
    prepared = prepare_pallas_params(params)

    out = discriminator_pallas(img, labels, prepared)
    out = jax.block_until_ready(out)
    assert out.shape == (BATCH, 1), out.shape

    ref = discriminator_ref(img, labels, params)
    np.testing.assert_allclose(np.asarray(out), np.asarray(ref), rtol=1e-4, atol=1e-5)

    print("KERNEL_OK")
</pallas_src>

<mosaic_0001>
module attributes {stable_mosaic.version = 11 : i64} {
  func.func @kernel(%arg0: i32, %arg1: memref<128x32xf32, #tpu.memory_space<vmem>>, %arg2: memref<32x64xf32, #tpu.memory_space<vmem>>, %arg3: memref<3x64xf32, #tpu.memory_space<vmem>>, %arg4: memref<1024x128xf32, #tpu.memory_space<any>>, %arg5: memref<3x128xf32, #tpu.memory_space<vmem>>, %arg6: memref<256x64xbf16, #tpu.memory_space<any>>, %arg7: memref<16x128xf32, #tpu.memory_space<vmem>>, %arg8: memref<1x1xf32, #tpu.memory_space<vmem>>, %arg9: memref<2x1xf32, #tpu.memory_space<vmem>>, %arg10: memref<1024x128xf32, #tpu.memory_space<vmem>>, %arg11: memref<256x64xbf16, #tpu.memory_space<vmem>>, %arg12: memref<2x!tpu.dma_semaphore, #tpu.memory_space<semaphore_mem>>) attributes {dimension_semantics = [#tpu.dimension_semantics<arbitrary>], iteration_bounds = array<i64: 1>, scalar_prefetch = 0 : i64, scratch_operands = 3 : i64, tpu.core_type = #tpu.core_type<tc>, window_params = [{pipeline_mode = #tpu.pipeline_mode<synchronous>, transform_indices = @transform_0, window_bounds = array<i64: 128, 32>}, {pipeline_mode = #tpu.pipeline_mode<synchronous>, transform_indices = @transform_1, window_bounds = array<i64: 32, 64>}, {pipeline_mode = #tpu.pipeline_mode<synchronous>, transform_indices = @transform_2, window_bounds = array<i64: 3, 64>}, {}, {pipeline_mode = #tpu.pipeline_mode<synchronous>, transform_indices = @transform_4, window_bounds = array<i64: 3, 128>}, {}, {pipeline_mode = #tpu.pipeline_mode<synchronous>, transform_indices = @transform_6, window_bounds = array<i64: 16, 128>}, {pipeline_mode = #tpu.pipeline_mode<synchronous>, transform_indices = @transform_7, window_bounds = array<i64: 1, 1>}, {pipeline_mode = #tpu.pipeline_mode<synchronous>, transform_indices = @transform_8, window_bounds = array<i64: 2, 1>}]} {
    %c0_i32 = arith.constant 0 : i32
    %0 = tpu.memref_slice %arg12[%c0_i32] : memref<2x!tpu.dma_semaphore, #tpu.memory_space<semaphore_mem>> -> memref<1x!tpu.dma_semaphore, #tpu.memory_space<semaphore_mem>>
    %1 = tpu.memref_squeeze %0 : memref<1x!tpu.dma_semaphore, #tpu.memory_space<semaphore_mem>> -> memref<!tpu.dma_semaphore, #tpu.memory_space<semaphore_mem>>
    tpu.enqueue_dma source(%arg4 : memref<1024x128xf32, #tpu.memory_space<any>>) target(%arg10 : memref<1024x128xf32, #tpu.memory_space<vmem>>) target_semaphore(%1 : memref<!tpu.dma_semaphore, #tpu.memory_space<semaphore_mem>>)
    %c1_i32 = arith.constant 1 : i32
    %2 = tpu.memref_slice %arg12[%c1_i32] : memref<2x!tpu.dma_semaphore, #tpu.memory_space<semaphore_mem>> -> memref<1x!tpu.dma_semaphore, #tpu.memory_space<semaphore_mem>>
    %3 = tpu.memref_squeeze %2 : memref<1x!tpu.dma_semaphore, #tpu.memory_space<semaphore_mem>> -> memref<!tpu.dma_semaphore, #tpu.memory_space<semaphore_mem>>
    tpu.enqueue_dma source(%arg6 : memref<256x64xbf16, #tpu.memory_space<any>>) target(%arg11 : memref<256x64xbf16, #tpu.memory_space<vmem>>) target_semaphore(%3 : memref<!tpu.dma_semaphore, #tpu.memory_space<semaphore_mem>>)
    %c0 = arith.constant 0 : index
    %c0_0 = arith.constant 0 : index
    %4 = vector.load %arg1[%c0, %c0_0] : memref<128x32xf32, #tpu.memory_space<vmem>>, vector<128x32xf32>
    %c0_1 = arith.constant 0 : index
    %c0_2 = arith.constant 0 : index
    %5 = vector.load %arg2[%c0_1, %c0_2] : memref<32x64xf32, #tpu.memory_space<vmem>>, vector<32x64xf32>
    %cst = arith.constant dense<0.000000e+00> : vector<128x64xf32>
    %6 = tpu.matmul %4, %5, %cst {dimension_numbers = #tpu.dot_dimension_numbers<[1], [0], [0], [1], [0, 0, 1, 1], [], []>} : vector<128x32xf32>, vector<32x64xf32>, vector<128x64xf32> -> vector<128x64xf32>
    %c0_3 = arith.constant 0 : index
    %c0_4 = arith.constant 0 : index
    %7 = vector.load %arg3[%c0_3, %c0_4] : memref<3x64xf32, #tpu.memory_space<vmem>>, vector<3x64xf32>
    %8 = vector.extract_strided_slice %7 {offsets = [0, 0], sizes = [1, 64], strides = [1, 1]} : vector<3x64xf32> to vector<1x64xf32>
    %9 = vector.broadcast %8 : vector<1x64xf32> to vector<128x64xf32>
    %10 = arith.addf %6, %9 : vector<128x64xf32>
    %cst_5 = arith.constant 0.000000e+00 : f32
    %11 = vector.broadcast %cst_5 : f32 to vector<128x64xf32>
    %12 = arith.cmpf ogt, %10, %11 : vector<128x64xf32>
    %cst_6 = arith.constant 2.000000e-01 : f32
    %13 = vector.broadcast %cst_6 : f32 to vector<128x64xf32>
    %14 = arith.mulf %13, %10 : vector<128x64xf32>
    %15 = arith.select %12, %10, %14 : vector<128x64xi1>, vector<128x64xf32>
    %cst_7 = arith.constant dense<0.000000e+00> : vector<64xf32>
    %16 = vector.multi_reduction <add>, %15, %cst_7 [0] : vector<128x64xf32> to vector<64xf32>
    %17 = vector.shape_cast %16 : vector<64xf32> to vector<1x64xf32>
    %cst_8 = arith.constant 1.280000e+02 : f32
    %18 = vector.broadcast %cst_8 : f32 to vector<1x64xf32>
    %19 = arith.divf %17, %18 : vector<1x64xf32>
    %20 = vector.broadcast %19 : vector<1x64xf32> to vector<128x64xf32>
    %21 = arith.subf %15, %20 : vector<128x64xf32>
    %22 = arith.mulf %21, %21 : vector<128x64xf32>
    %cst_9 = arith.constant dense<0.000000e+00> : vector<64xf32>
    %23 = vector.multi_reduction <add>, %22, %cst_9 [0] : vector<128x64xf32> to vector<64xf32>
    %24 = vector.shape_cast %23 : vector<64xf32> to vector<1x64xf32>
    %cst_10 = arith.constant 1.280000e+02 : f32
    %25 = vector.broadcast %cst_10 : f32 to vector<1x64xf32>
    %26 = arith.divf %24, %25 : vector<1x64xf32>
    %27 = vector.extract_strided_slice %7 {offsets = [1, 0], sizes = [1, 64], strides = [1, 1]} : vector<3x64xf32> to vector<1x64xf32>
    %cst_11 = arith.constant 9.99999974E-6 : f32
    %28 = vector.broadcast %cst_11 : f32 to vector<1x64xf32>
    %29 = arith.addf %26, %28 : vector<1x64xf32>
    %30 = math.rsqrt %29 : vector<1x64xf32>
    %31 = arith.mulf %27, %30 : vector<1x64xf32>
    %32 = vector.broadcast %31 : vector<1x64xf32> to vector<128x64xf32>
    %33 = arith.mulf %21, %32 : vector<128x64xf32>
    %34 = vector.extract_strided_slice %7 {offsets = [2, 0], sizes = [1, 64], strides = [1, 1]} : vector<3x64xf32> to vector<1x64xf32>
    %35 = vector.broadcast %34 : vector<1x64xf32> to vector<128x64xf32>
    %36 = arith.addf %33, %35 : vector<128x64xf32>
    %c0_i32_12 = arith.constant 0 : i32
    %37 = tpu.memref_slice %arg12[%c0_i32_12] : memref<2x!tpu.dma_semaphore, #tpu.memory_space<semaphore_mem>> -> memref<1x!tpu.dma_semaphore, #tpu.memory_space<semaphore_mem>>
    %38 = tpu.memref_squeeze %37 : memref<1x!tpu.dma_semaphore, #tpu.memory_space<semaphore_mem>> -> memref<!tpu.dma_semaphore, #tpu.memory_space<semaphore_mem>>
    tpu.wait_dma2 semaphore(%38 : memref<!tpu.dma_semaphore, #tpu.memory_space<semaphore_mem>>) src(%arg4 : memref<1024x128xf32, #tpu.memory_space<any>>) dst(%arg10 : memref<1024x128xf32, #tpu.memory_space<vmem>>)
    %c1_i32_13 = arith.constant 1 : i32
    %39 = tpu.memref_slice %arg12[%c1_i32_13] : memref<2x!tpu.dma_semaphore, #tpu.memory_space<semaphore_mem>> -> memref<1x!tpu.dma_semaphore, #tpu.memory_space<semaphore_mem>>
    %40 = tpu.memref_squeeze %39 : memref<1x!tpu.dma_semaphore, #tpu.memory_space<semaphore_mem>> -> memref<!tpu.dma_semaphore, #tpu.memory_space<semaphore_mem>>
    tpu.wait_dma2 semaphore(%40 : memref<!tpu.dma_semaphore, #tpu.memory_space<semaphore_mem>>) src(%arg6 : memref<256x64xbf16, #tpu.memory_space<any>>) dst(%arg11 : memref<256x64xbf16, #tpu.memory_space<vmem>>)
    %c0_14 = arith.constant 0 : index
    %c0_15 = arith.constant 0 : index
    %41 = vector.load %arg11[%c0_14, %c0_15] : memref<256x64xbf16, #tpu.memory_space<vmem>>, vector<256x64xbf16>
    %42 = arith.extf %41 : vector<256x64xbf16> to vector<256x64xf32>
    %43 = vector.extract_strided_slice %36 {offsets = [0, 0], sizes = [64, 64], strides = [1, 1]} : vector<128x64xf32> to vector<64x64xf32>
    %cst_16 = arith.constant dense<0.000000e+00> : vector<256x64xf32>
    %44 = tpu.matmul %42, %43, %cst_16 {dimension_numbers = #tpu.dot_dimension_numbers<[1], [0], [0], [1], [0, 0, 1, 1], [], []>} : vector<256x64xf32>, vector<64x64xf32>, vector<256x64xf32> -> vector<256x64xf32>
    %45 = vector.extract_strided_slice %36 {offsets = [64, 0], sizes = [64, 64], strides = [1, 1]} : vector<128x64xf32> to vector<64x64xf32>
    %cst_17 = arith.constant dense<0.000000e+00> : vector<256x64xf32>
    %46 = tpu.matmul %42, %45, %cst_17 {dimension_numbers = #tpu.dot_dimension_numbers<[1], [0], [0], [1], [0, 0, 1, 1], [], []>} : vector<256x64xf32>, vector<64x64xf32>, vector<256x64xf32> -> vector<256x64xf32>
    %47 = vector.extract_strided_slice %44 {offsets = [0, 0], sizes = [16, 64], strides = [1, 1]} : vector<256x64xf32> to vector<16x64xf32>
    %48 = vector.extract_strided_slice %46 {offsets = [0, 0], sizes = [16, 64], strides = [1, 1]} : vector<256x64xf32> to vector<16x64xf32>
    %49 = tpu.concatenate %47, %48 in 0 : vector<16x64xf32>, vector<16x64xf32> -> vector<32x64xf32>
    %c0_18 = arith.constant 0 : index
    %c0_19 = arith.constant 0 : index
    %50 = vector.load %arg10[%c0_18, %c0_19] : memref<1024x128xf32, #tpu.memory_space<vmem>>, vector<64x128xf32>
    %cst_20 = arith.constant dense<0.000000e+00> : vector<32x128xf32>
    %51 = tpu.matmul %49, %50, %cst_20 {dimension_numbers = #tpu.dot_dimension_numbers<[1], [0], [0], [1], [0, 0, 1, 1], [], []>} : vector<32x64xf32>, vector<64x128xf32>, vector<32x128xf32> -> vector<32x128xf32>
    %52 = vector.extract_strided_slice %44 {offsets = [16, 0], sizes = [16, 64], strides = [1, 1]} : vector<256x64xf32> to vector<16x64xf32>
    %53 = vector.extract_strided_slice %46 {offsets = [16, 0], sizes = [16, 64], strides = [1, 1]} : vector<256x64xf32> to vector<16x64xf32>
    %54 = tpu.concatenate %52, %53 in 0 : vector<16x64xf32>, vector<16x64xf32> -> vector<32x64xf32>
    %c64 = arith.constant 64 : index
    %c0_21 = arith.constant 0 : index
    %55 = vector.load %arg10[%c64, %c0_21] : memref<1024x128xf32, #tpu.memory_space<vmem>>, vector<64x128xf32>
    %cst_22 = arith.constant dense<0.000000e+00> : vector<32x128xf32>
    %56 = tpu.matmul %54, %55, %cst_22 {dimension_numbers = #tpu.dot_dimension_numbers<[1], [0], [0], [1], [0, 0, 1, 1], [], []>} : vector<32x64xf32>, vector<64x128xf32>, vector<32x128xf32> -> vector<32x128xf32>
    %57 = vector.extract_strided_slice %44 {offsets = [32, 0], sizes = [16, 64], strides = [1, 1]} : vector<256x64xf32> to vector<16x64xf32>
    %58 = vector.extract_strided_slice %46 {offsets = [32, 0], sizes = [16, 64], strides = [1, 1]} : vector<256x64xf32> to vector<16x64xf32>
    %59 = tpu.concatenate %57, %58 in 0 : vector<16x64xf32>, vector<16x64xf32> -> vector<32x64xf32>
    %c128 = arith.constant 128 : index
    %c0_23 = arith.constant 0 : index
    %60 = vector.load %arg10[%c128, %c0_23] : memref<1024x128xf32, #tpu.memory_space<vmem>>, vector<64x128xf32>
    %cst_24 = arith.constant dense<0.000000e+00> : vector<32x128xf32>
    %61 = tpu.matmul %59, %60, %cst_24 {dimension_numbers = #tpu.dot_dimension_numbers<[1], [0], [0], [1], [0, 0, 1, 1], [], []>} : vector<32x64xf32>, vector<64x128xf32>, vector<32x128xf32> -> vector<32x128xf32>
    %62 = vector.extract_strided_slice %44 {offsets = [48, 0], sizes = [16, 64], strides = [1, 1]} : vector<256x64xf32> to vector<16x64xf32>
    %63 = vector.extract_strided_slice %46 {offsets = [48, 0], sizes = [16, 64], strides = [1, 1]} : vector<256x64xf32> to vector<16x64xf32>
    %64 = tpu.concatenate %62, %63 in 0 : vector<16x64xf32>, vector<16x64xf32> -> vector<32x64xf32>
    %c192 = arith.constant 192 : index
    %c0_25 = arith.constant 0 : index
    %65 = vector.load %arg10[%c192, %c0_25] : memref<1024x128xf32, #tpu.memory_space<vmem>>, vector<64x128xf32>
    %cst_26 = arith.constant dense<0.000000e+00> : vector<32x128xf32>
    %66 = tpu.matmul %64, %65, %cst_26 {dimension_numbers = #tpu.dot_dimension_numbers<[1], [0], [0], [1], [0, 0, 1, 1], [], []>} : vector<32x64xf32>, vector<64x128xf32>, vector<32x128xf32> -> vector<32x128xf32>
    %67 = vector.extract_strided_slice %44 {offsets = [64, 0], sizes = [16, 64], strides = [1, 1]} : vector<256x64xf32> to vector<16x64xf32>
    %68 = vector.extract_strided_slice %46 {offsets = [64, 0], sizes = [16, 64], strides = [1, 1]} : vector<256x64xf32> to vector<16x64xf32>
    %69 = tpu.concatenate %67, %68 in 0 : vector<16x64xf32>, vector<16x64xf32> -> vector<32x64xf32>
    %c256 = arith.constant 256 : index
    %c0_27 = arith.constant 0 : index
    %70 = vector.load %arg10[%c256, %c0_27] : memref<1024x128xf32, #tpu.memory_space<vmem>>, vector<64x128xf32>
    %cst_28 = arith.constant dense<0.000000e+00> : vector<32x128xf32>
    %71 = tpu.matmul %69, %70, %cst_28 {dimension_numbers = #tpu.dot_dimension_numbers<[1], [0], [0], [1], [0, 0, 1, 1], [], []>} : vector<32x64xf32>, vector<64x128xf32>, vector<32x128xf32> -> vector<32x128xf32>
    %72 = vector.extract_strided_slice %44 {offsets = [80, 0], sizes = [16, 64], strides = [1, 1]} : vector<256x64xf32> to vector<16x64xf32>
    %73 = vector.extract_strided_slice %46 {offsets = [80, 0], sizes = [16, 64], strides = [1, 1]} : vector<256x64xf32> to vector<16x64xf32>
    %74 = tpu.concatenate %72, %73 in 0 : vector<16x64xf32>, vector<16x64xf32> -> vector<32x64xf32>
    %c320 = arith.constant 320 : index
    %c0_29 = arith.constant 0 : index
    %75 = vector.load %arg10[%c320, %c0_29] : memref<1024x128xf32, #tpu.memory_space<vmem>>, vector<64x128xf32>
    %cst_30 = arith.constant dense<0.000000e+00> : vector<32x128xf32>
    %76 = tpu.matmul %74, %75, %cst_30 {dimension_numbers = #tpu.dot_dimension_numbers<[1], [0], [0], [1], [0, 0, 1, 1], [], []>} : vector<32x64xf32>, vector<64x128xf32>, vector<32x128xf32> -> vector<32x128xf32>
    %77 = vector.extract_strided_slice %44 {offsets = [96, 0], sizes = [16, 64], strides = [1, 1]} : vector<256x64xf32> to vector<16x64xf32>
    %78 = vector.extract_strided_slice %46 {offsets = [96, 0], sizes = [16, 64], strides = [1, 1]} : vector<256x64xf32> to vector<16x64xf32>
    %79 = tpu.concatenate %77, %78 in 0 : vector<16x64xf32>, vector<16x64xf32> -> vector<32x64xf32>
    %c384 = arith.constant 384 : index
    %c0_31 = arith.constant 0 : index
    %80 = vector.load %arg10[%c384, %c0_31] : memref<1024x128xf32, #tpu.memory_space<vmem>>, vector<64x128xf32>
    %cst_32 = arith.constant dense<0.000000e+00> : vector<32x128xf32>
    %81 = tpu.matmul %79, %80, %cst_32 {dimension_numbers = #tpu.dot_dimension_numbers<[1], [0], [0], [1], [0, 0, 1, 1], [], []>} : vector<32x64xf32>, vector<64x128xf32>, vector<32x128xf32> -> vector<32x128xf32>
    %82 = vector.extract_strided_slice %44 {offsets = [112, 0], sizes = [16, 64], strides = [1, 1]} : vector<256x64xf32> to vector<16x64xf32>
    %83 = vector.extract_strided_slice %46 {offsets = [112, 0], sizes = [16, 64], strides = [1, 1]} : vector<256x64xf32> to vector<16x64xf32>
    %84 = tpu.concatenate %82, %83 in 0 : vector<16x64xf32>, vector<16x64xf32> -> vector<32x64xf32>
    %c448 = arith.constant 448 : index
    %c0_33 = arith.constant 0 : index
    %85 = vector.load %arg10[%c448, %c0_33] : memref<1024x128xf32, #tpu.memory_space<vmem>>, vector<64x128xf32>
    %cst_34 = arith.constant dense<0.000000e+00> : vector<32x128xf32>
    %86 = tpu.matmul %84, %85, %cst_34 {dimension_numbers = #tpu.dot_dimension_numbers<[1], [0], [0], [1], [0, 0, 1, 1], [], []>} : vector<32x64xf32>, vector<64x128xf32>, vector<32x128xf32> -> vector<32x128xf32>
    %87 = vector.extract_strided_slice %44 {offsets = [128, 0], sizes = [16, 64], strides = [1, 1]} : vector<256x64xf32> to vector<16x64xf32>
    %88 = vector.extract_strided_slice %46 {offsets = [128, 0], sizes = [16, 64], strides = [1, 1]} : vector<256x64xf32> to vector<16x64xf32>
    %89 = tpu.concatenate %87, %88 in 0 : vector<16x64xf32>, vector<16x64xf32> -> vector<32x64xf32>
    %c512 = arith.constant 512 : index
    %c0_35 = arith.constant 0 : index
    %90 = vector.load %arg10[%c512, %c0_35] : memref<1024x128xf32, #tpu.memory_space<vmem>>, vector<64x128xf32>
    %cst_36 = arith.constant dense<0.000000e+00> : vector<32x128xf32>
    %91 = tpu.matmul %89, %90, %cst_36 {dimension_numbers = #tpu.dot_dimension_numbers<[1], [0], [0], [1], [0, 0, 1, 1], [], []>} : vector<32x64xf32>, vector<64x128xf32>, vector<32x128xf32> -> vector<32x128xf32>
    %92 = vector.extract_strided_slice %44 {offsets = [144, 0], sizes = [16, 64], strides = [1, 1]} : vector<256x64xf32> to vector<16x64xf32>
    %93 = vector.extract_strided_slice %46 {offsets = [144, 0], sizes = [16, 64], strides = [1, 1]} : vector<256x64xf32> to vector<16x64xf32>
    %94 = tpu.concatenate %92, %93 in 0 : vector<16x64xf32>, vector<16x64xf32> -> vector<32x64xf32>
    %c576 = arith.constant 576 : index
    %c0_37 = arith.constant 0 : index
    %95 = vector.load %arg10[%c576, %c0_37] : memref<1024x128xf32, #tpu.memory_space<vmem>>, vector<64x128xf32>
    %cst_38 = arith.constant dense<0.000000e+00> : vector<32x128xf32>
    %96 = tpu.matmul %94, %95, %cst_38 {dimension_numbers = #tpu.dot_dimension_numbers<[1], [0], [0], [1], [0, 0, 1, 1], [], []>} : vector<32x64xf32>, vector<64x128xf32>, vector<32x128xf32> -> vector<32x128xf32>
    %97 = vector.extract_strided_slice %44 {offsets = [160, 0], sizes = [16, 64], strides = [1, 1]} : vector<256x64xf32> to vector<16x64xf32>
    %98 = vector.extract_strided_slice %46 {offsets = [160, 0], sizes = [16, 64], strides = [1, 1]} : vector<256x64xf32> to vector<16x64xf32>
    %99 = tpu.concatenate %97, %98 in 0 : vector<16x64xf32>, vector<16x64xf32> -> vector<32x64xf32>
    %c640 = arith.constant 640 : index
    %c0_39 = arith.constant 0 : index
    %100 = vector.load %arg10[%c640, %c0_39] : memref<1024x128xf32, #tpu.memory_space<vmem>>, vector<64x128xf32>
    %cst_40 = arith.constant dense<0.000000e+00> : vector<32x128xf32>
    %101 = tpu.matmul %99, %100, %cst_40 {dimension_numbers = #tpu.dot_dimension_numbers<[1], [0], [0], [1], [0, 0, 1, 1], [], []>} : vector<32x64xf32>, vector<64x128xf32>, vector<32x128xf32> -> vector<32x128xf32>
    %102 = vector.extract_strided_slice %44 {offsets = [176, 0], sizes = [16, 64], strides = [1, 1]} : vector<256x64xf32> to vector<16x64xf32>
    %103 = vector.extract_strided_slice %46 {offsets = [176, 0], sizes = [16, 64], strides = [1, 1]} : vector<256x64xf32> to vector<16x64xf32>
    %104 = tpu.concatenate %102, %103 in 0 : vector<16x64xf32>, vector<16x64xf32> -> vector<32x64xf32>
    %c704 = arith.constant 704 : index
    %c0_41 = arith.constant 0 : index
    %105 = vector.load %arg10[%c704, %c0_41] : memref<1024x128xf32, #tpu.memory_space<vmem>>, vector<64x128xf32>
    %cst_42 = arith.constant dense<0.000000e+00> : vector<32x128xf32>
    %106 = tpu.matmul %104, %105, %cst_42 {dimension_numbers = #tpu.dot_dimension_numbers<[1], [0], [0], [1], [0, 0, 1, 1], [], []>} : vector<32x64xf32>, vector<64x128xf32>, vector<32x128xf32> -> vector<32x128xf32>
    %107 = vector.extract_strided_slice %44 {offsets = [192, 0], sizes = [16, 64], strides = [1, 1]} : vector<256x64xf32> to vector<16x64xf32>
    %108 = vector.extract_strided_slice %46 {offsets = [192, 0], sizes = [16, 64], strides = [1, 1]} : vector<256x64xf32> to vector<16x64xf32>
    %109 = tpu.concatenate %107, %108 in 0 : vector<16x64xf32>, vector<16x64xf32> -> vector<32x64xf32>
    %c768 = arith.constant 768 : index
    %c0_43 = arith.constant 0 : index
    %110 = vector.load %arg10[%c768, %c0_43] : memref<1024x128xf32, #tpu.memory_space<vmem>>, vector<64x128xf32>
    %cst_44 = arith.constant dense<0.000000e+00> : vector<32x128xf32>
    %111 = tpu.matmul %109, %110, %cst_44 {dimension_numbers = #tpu.dot_dimension_numbers<[1], [0], [0], [1], [0, 0, 1, 1], [], []>} : vector<32x64xf32>, vector<64x128xf32>, vector<32x128xf32> -> vector<32x128xf32>
    %112 = vector.extract_strided_slice %44 {offsets = [208, 0], sizes = [16, 64], strides = [1, 1]} : vector<256x64xf32> to vector<16x64xf32>
    %113 = vector.extract_strided_slice %46 {offsets = [208, 0], sizes = [16, 64], strides = [1, 1]} : vector<256x64xf32> to vector<16x64xf32>
    %114 = tpu.concatenate %112, %113 in 0 : vector<16x64xf32>, vector<16x64xf32> -> vector<32x64xf32>
    %c832 = arith.constant 832 : index
    %c0_45 = arith.constant 0 : index
    %115 = vector.load %arg10[%c832, %c0_45] : memref<1024x128xf32, #tpu.memory_space<vmem>>, vector<64x128xf32>
    %cst_46 = arith.constant dense<0.000000e+00> : vector<32x128xf32>
    %116 = tpu.matmul %114, %115, %cst_46 {dimension_numbers = #tpu.dot_dimension_numbers<[1], [0], [0], [1], [0, 0, 1, 1], [], []>} : vector<32x64xf32>, vector<64x128xf32>, vector<32x128xf32> -> vector<32x128xf32>
    %117 = vector.extract_strided_slice %44 {offsets = [224, 0], sizes = [16, 64], strides = [1, 1]} : vector<256x64xf32> to vector<16x64xf32>
    %118 = vector.extract_strided_slice %46 {offsets = [224, 0], sizes = [16, 64], strides = [1, 1]} : vector<256x64xf32> to vector<16x64xf32>
    %119 = tpu.concatenate %117, %118 in 0 : vector<16x64xf32>, vector<16x64xf32> -> vector<32x64xf32>
    %c896 = arith.constant 896 : index
    %c0_47 = arith.constant 0 : index
    %120 = vector.load %arg10[%c896, %c0_47] : memref<1024x128xf32, #tpu.memory_space<vmem>>, vector<64x128xf32>
    %cst_48 = arith.constant dense<0.000000e+00> : vector<32x128xf32>
    %121 = tpu.matmul %119, %120, %cst_48 {dimension_numbers = #tpu.dot_dimension_numbers<[1], [0], [0], [1], [0, 0, 1, 1], [], []>} : vector<32x64xf32>, vector<64x128xf32>, vector<32x128xf32> -> vector<32x128xf32>
    %122 = vector.extract_strided_slice %44 {offsets = [240, 0], sizes = [16, 64], strides = [1, 1]} : vector<256x64xf32> to vector<16x64xf32>
    %123 = vector.extract_strided_slice %46 {offsets = [240, 0], sizes = [16, 64], strides = [1, 1]} : vector<256x64xf32> to vector<16x64xf32>
    %124 = tpu.concatenate %122, %123 in 0 : vector<16x64xf32>, vector<16x64xf32> -> vector<32x64xf32>
    %c960 = arith.constant 960 : index
    %c0_49 = arith.constant 0 : index
    %125 = vector.load %arg10[%c960, %c0_49] : memref<1024x128xf32, #tpu.memory_space<vmem>>, vector<64x128xf32>
    %cst_50 = arith.constant dense<0.000000e+00> : vector<32x128xf32>
    %126 = tpu.matmul %124, %125, %cst_50 {dimension_numbers = #tpu.dot_dimension_numbers<[1], [0], [0], [1], [0, 0, 1, 1], [], []>} : vector<32x64xf32>, vector<64x128xf32>, vector<32x128xf32> -> vector<32x128xf32>
    %127 = arith.addf %51, %56 : vector<32x128xf32>
    %128 = arith.addf %61, %66 : vector<32x128xf32>
    %129 = arith.addf %71, %76 : vector<32x128xf32>
    %130 = arith.addf %81, %86 : vector<32x128xf32>
    %131 = arith.addf %91, %96 : vector<32x128xf32>
    %132 = arith.addf %101, %106 : vector<32x128xf32>
    %133 = arith.addf %111, %116 : vector<32x128xf32>
    %134 = arith.addf %121, %126 : vector<32x128xf32>
    %135 = arith.addf %127, %128 : vector<32x128xf32>
    %136 = arith.addf %129, %130 : vector<32x128xf32>
    %137 = arith.addf %131, %132 : vector<32x128xf32>
    %138 = arith.addf %133, %134 : vector<32x128xf32>
    %139 = arith.addf %135, %136 : vector<32x128xf32>
    %140 = arith.addf %137, %138 : vector<32x128xf32>
    %141 = arith.addf %139, %140 : vector<32x128xf32>
    %c0_51 = arith.constant 0 : index
    %c0_52 = arith.constant 0 : index
    %142 = vector.load %arg5[%c0_51, %c0_52] : memref<3x128xf32, #tpu.memory_space<vmem>>, vector<3x128xf32>
    %143 = vector.extract_strided_slice %142 {offsets = [0, 0], sizes = [1, 128], strides = [1, 1]} : vector<3x128xf32> to vector<1x128xf32>
    %144 = vector.broadcast %143 : vector<1x128xf32> to vector<32x128xf32>
    %145 = arith.addf %141, %144 : vector<32x128xf32>
    %cst_53 = arith.constant 0.000000e+00 : f32
    %146 = vector.broadcast %cst_53 : f32 to vector<32x128xf32>
    %147 = arith.cmpf ogt, %145, %146 : vector<32x128xf32>
    %cst_54 = arith.constant 2.000000e-01 : f32
    %148 = vector.broadcast %cst_54 : f32 to vector<32x128xf32>
    %149 = arith.mulf %148, %145 : vector<32x128xf32>
    %150 = arith.select %147, %145, %149 : vector<32x128xi1>, vector<32x128xf32>
    %cst_55 = arith.constant dense<0.000000e+00> : vector<128xf32>
    %151 = vector.multi_reduction <add>, %150, %cst_55 [0] : vector<32x128xf32> to vector<128xf32>
    %152 = vector.shape_cast %151 : vector<128xf32> to vector<1x128xf32>
    %cst_56 = arith.constant 3.200000e+01 : f32
    %153 = vector.broadcast %cst_56 : f32 to vector<1x128xf32>
    %154 = arith.divf %152, %153 : vector<1x128xf32>
    %155 = vector.broadcast %154 : vector<1x128xf32> to vector<32x128xf32>
    %156 = arith.subf %150, %155 : vector<32x128xf32>
    %157 = arith.mulf %156, %156 : vector<32x128xf32>
    %cst_57 = arith.constant dense<0.000000e+00> : vector<128xf32>
    %158 = vector.multi_reduction <add>, %157, %cst_57 [0] : vector<32x128xf32> to vector<128xf32>
    %159 = vector.shape_cast %158 : vector<128xf32> to vector<1x128xf32>
    %cst_58 = arith.constant 3.200000e+01 : f32
    %160 = vector.broadcast %cst_58 : f32 to vector<1x128xf32>
    %161 = arith.divf %159, %160 : vector<1x128xf32>
    %162 = vector.extract_strided_slice %142 {offsets = [1, 0], sizes = [1, 128], strides = [1, 1]} : vector<3x128xf32> to vector<1x128xf32>
    %cst_59 = arith.constant 9.99999974E-6 : f32
    %163 = vector.broadcast %cst_59 : f32 to vector<1x128xf32>
    %164 = arith.addf %161, %163 : vector<1x128xf32>
    %165 = math.rsqrt %164 : vector<1x128xf32>
    %166 = arith.mulf %162, %165 : vector<1x128xf32>
    %167 = vector.broadcast %166 : vector<1x128xf32> to vector<32x128xf32>
    %168 = arith.mulf %156, %167 : vector<32x128xf32>
    %169 = vector.extract_strided_slice %142 {offsets = [2, 0], sizes = [1, 128], strides = [1, 1]} : vector<3x128xf32> to vector<1x128xf32>
    %170 = vector.broadcast %169 : vector<1x128xf32> to vector<32x128xf32>
    %171 = arith.addf %168, %170 : vector<32x128xf32>
    %172 = vector.shape_cast %171 : vector<32x128xf32> to vector<2x16x128xf32>
    %c0_60 = arith.constant 0 : index
    %c0_61 = arith.constant 0 : index
    %173 = vector.load %arg7[%c0_60, %c0_61] : memref<16x128xf32, #tpu.memory_space<vmem>>, vector<16x128xf32>
    %174 = vector.shape_cast %173 : vector<16x128xf32> to vector<1x16x128xf32>
    %175 = vector.broadcast %174 : vector<1x16x128xf32> to vector<2x16x128xf32>
    %176 = arith.mulf %172, %175 : vector<2x16x128xf32>
    %cst_62 = arith.constant dense<0.000000e+00> : vector<2x16xf32>
    %177 = vector.multi_reduction <add>, %176, %cst_62 [2] : vector<2x16x128xf32> to vector<2x16xf32>
    %cst_63 = arith.constant dense<0.000000e+00> : vector<2xf32>
    %178 = vector.multi_reduction <add>, %177, %cst_63 [1] : vector<2x16xf32> to vector<2xf32>
    %179 = vector.shape_cast %178 : vector<2xf32> to vector<2x1xf32>
    %c0_64 = arith.constant 0 : index
    %c0_65 = arith.constant 0 : index
    %180 = vector.load %arg8[%c0_64, %c0_65] : memref<1x1xf32, #tpu.memory_space<vmem>>, vector<1x1xf32>
    %181 = vector.broadcast %180 : vector<1x1xf32> to vector<2x1xf32>
    %182 = arith.addf %179, %181 : vector<2x1xf32>
    %cst_66 = arith.constant 0.000000e+00 : f32
    %183 = vector.broadcast %cst_66 : f32 to vector<2x1xf32>
    %184 = arith.subf %183, %182 : vector<2x1xf32>
    %185 = math.exp %184 : vector<2x1xf32>
    %cst_67 = arith.constant 1.000000e+00 : f32
    %186 = vector.broadcast %cst_67 : f32 to vector<2x1xf32>
    %187 = arith.addf %186, %185 : vector<2x1xf32>
    %cst_68 = arith.constant 1.000000e+00 : f32
    %188 = vector.broadcast %cst_68 : f32 to vector<2x1xf32>
    %189 = arith.divf %188, %187 : vector<2x1xf32>
    %c0_69 = arith.constant 0 : index
    %c0_70 = arith.constant 0 : index
    %190 = vector.load %arg9[%c0_69, %c0_70] : memref<2x1xf32, #tpu.memory_space<vmem>>, vector<2x1xf32>
    tpu.vector_store %arg9[%c0_69, %c0_70], %189 {strides = array<i32>} : memref<2x1xf32, #tpu.memory_space<vmem>>, vector<2x1xf32>,
    return
  }
  func.func @transform_0(%arg0: i32) -> (i32, i32) {
    %c0_i32 = arith.constant 0 : i32
    %c0_i32_0 = arith.constant 0 : i32
    %c0_i32_1 = arith.constant 0 : i32
    return %c0_i32, %c0_i32_0 : i32, i32
  }
  func.func @transform_1(%arg0: i32) -> (i32, i32) {
    %c0_i32 = arith.constant 0 : i32
    %c0_i32_0 = arith.constant 0 : i32
    %c0_i32_1 = arith.constant 0 : i32
    return %c0_i32, %c0_i32_0 : i32, i32
  }
  func.func @transform_2(%arg0: i32) -> (i32, i32) {
    %c0_i32 = arith.constant 0 : i32
    %c0_i32_0 = arith.constant 0 : i32
    %c0_i32_1 = arith.constant 0 : i32
    return %c0_i32, %c0_i32_0 : i32, i32
  }
  func.func @transform_4(%arg0: i32) -> (i32, i32) {
    %c0_i32 = arith.constant 0 : i32
    %c0_i32_0 = arith.constant 0 : i32
    %c0_i32_1 = arith.constant 0 : i32
    return %c0_i32, %c0_i32_0 : i32, i32
  }
  func.func @transform_6(%arg0: i32) -> (i32, i32) {
    %c0_i32 = arith.constant 0 : i32
    %c0_i32_0 = arith.constant 0 : i32
    %c0_i32_1 = arith.constant 0 : i32
    return %c0_i32, %c0_i32_0 : i32, i32
  }
  func.func @transform_7(%arg0: i32) -> (i32, i32) {
    %c0_i32 = arith.constant 0 : i32
    %c0_i32_0 = arith.constant 0 : i32
    %c0_i32_1 = arith.constant 0 : i32
    return %c0_i32, %c0_i32_0 : i32, i32
  }
  func.func @transform_8(%arg0: i32) -> (i32, i32) {
    %c0_i32 = arith.constant 0 : i32
    %c0_i32_0 = arith.constant 0 : i32
    %c0_i32_1 = arith.constant 0 : i32
    return %c0_i32, %c0_i32_0 : i32, i32
  }
}

</mosaic_0001>

<bundles_post_ra>
// kernel: discriminator_pallas.1
= control target key start
LH: loop header
LB: loop body
LE: loop exit
PB: predicated region body
PF: predicated region fallthrough
CT: control target
= control target key end

     0   :  { %s6105_s0 = inlined_call_operand.vmem [shape: f32[128,32], index: 0, kind: input, shape index: {}]   ;;  %s6106_s1 = inlined_call_operand.vmem [shape: f32[32,64], index: 1, kind: input, shape index: {}]   ;;  %s6107_s2 = inlined_call_operand.vmem [shape: f32[3,64], index: 2, kind: input, shape index: {}]   ;;  %s6108_s3 = inlined_call_operand.vmem [shape: f32[1024,128], index: 3, kind: input, shape index: {}]   ;;  %s6109_s4 = inlined_call_operand.vmem [shape: f32[3,128], index: 4, kind: input, shape index: {}]   ;;  %s6110_s5 = inlined_call_operand.vmem [shape: bf16[256,64], index: 5, kind: input, shape index: {}]   ;;  %s6111_s6 = inlined_call_operand.vmem [shape: f32[16,128], index: 6, kind: input, shape index: {}]   ;;  %s6112_s7 = inlined_call_operand.<no memory space> [shape: f32[1,1], index: 7, kind: input, shape index: {}]   ;;  %s6113_s8 = inlined_call_operand.vmem [shape: f32[2,1], index: 8, kind: output, shape index: {}]  }
   0x1   :  { %v13_v0 = vstv %s6112_s7  ;;  %v4660_v1 = vld [vmem:[%s6108_s3] sm:$0xff]  ;;  %v4665_v2 = vld [vmem:[%s6108_s3 + $0x8] sm:$0xff]  ;;  %v4670_v3 = vld [vmem:[%s6108_s3 + $0x10] sm:$0xff] }
   0x2   :  { %6117 = vst [vmem:[#allocation10_spill] sm:$0xff] %v4660_v1  ;;  %6118 = vst [vmem:[#allocation11_spill] sm:$0xff] %v4665_v2  ;;  %v4675_v4 = vld [vmem:[%s6108_s3 + $0x18] sm:$0xff]  ;;  %v4680_v5 = vld [vmem:[%s6108_s3 + $0x20] sm:$0xff] }
   0x3   :  { %6119 = vst [vmem:[#allocation12_spill] sm:$0xff] %v4670_v3  ;;  %14 = vst [vmem:[#allocation5] sm:$0x1] %v13_v0  ;;  %v4685_v6 = vld [vmem:[%s6108_s3 + $0x28] sm:$0xff]  ;;  %v4690_v7 = vld [vmem:[%s6108_s3 + $0x30] sm:$0xff] }
   0x4   :  { %6120 = vst [vmem:[#allocation13_spill] sm:$0xff] %v4675_v4  ;;  %6121 = vst [vmem:[#allocation14_spill] sm:$0xff] %v4680_v5  ;;  %v4695_v8 = vld [vmem:[%s6108_s3 + $0x38] sm:$0xff]  ;;  %v4700_v9 = vld [vmem:[%s6108_s3 + $0x40] sm:$0xff] }
   0x5   :  { %6122 = vst [vmem:[#allocation15_spill] sm:$0xff] %v4685_v6  ;;  %6123 = vst [vmem:[#allocation16_spill] sm:$0xff] %v4690_v7  ;;  %v4705_v10 = vld [vmem:[%s6108_s3 + $0x48] sm:$0xff]  ;;  %v4710_v11 = vld [vmem:[%s6108_s3 + $0x50] sm:$0xff] }
   0x6   :  { %6124 = vst [vmem:[#allocation17_spill] sm:$0xff] %v4695_v8  ;;  %6125 = vst [vmem:[#allocation18_spill] sm:$0xff] %v4710_v11  ;;  %v4715_v12 = vld [vmem:[%s6108_s3 + $0x58] sm:$0xff]  ;;  %v4720_v13 = vld [vmem:[%s6108_s3 + $0x60] sm:$0xff] }
   0x7   :  { %6126 = vst [vmem:[#allocation19_spill] sm:$0xff] %v4715_v12  ;;  %6127 = vst [vmem:[#allocation20_spill] sm:$0xff] %v4720_v13  ;;  %v4725_v14 = vld [vmem:[%s6108_s3 + $0x68] sm:$0xff]  ;;  %v4730_v15 = vld [vmem:[%s6108_s3 + $0x70] sm:$0xff] }
   0x8   :  { %6128 = vst [vmem:[#allocation21_spill] sm:$0xff] %v4725_v14  ;;  %6129 = vst [vmem:[#allocation22_spill] sm:$0xff] %v4730_v15  ;;  %v4735_v16 = vld [vmem:[%s6108_s3 + $0x78] sm:$0xff]  ;;  %v4740_v17 = vld [vmem:[%s6108_s3 + $0x80] sm:$0xff] }
   0x9   :  { %6130 = vst [vmem:[#allocation23_spill] sm:$0xff] %v4735_v16  ;;  %6131 = vst [vmem:[#allocation24_spill] sm:$0xff] %v4740_v17  ;;  %v4745_v18 = vld [vmem:[%s6108_s3 + $0x88] sm:$0xff]  ;;  %v4750_v19 = vld [vmem:[%s6108_s3 + $0x90] sm:$0xff] }
   0xa   :  { %6132 = vst [vmem:[#allocation25_spill] sm:$0xff] %v4745_v18  ;;  %6133 = vst [vmem:[#allocation26_spill] sm:$0xff] %v4750_v19  ;;  %v4755_v20 = vld [vmem:[%s6108_s3 + $0x98] sm:$0xff]  ;;  %v4760_v21 = vld [vmem:[%s6108_s3 + $0xa0] sm:$0xff] }
   0xb   :  { %6134 = vst [vmem:[#allocation27_spill] sm:$0xff] %v4755_v20  ;;  %6135 = vst [vmem:[#allocation28_spill] sm:$0xff] %v4760_v21  ;;  %v4765_v22 = vld [vmem:[%s6108_s3 + $0xa8] sm:$0xff]  ;;  %v4770_v23 = vld [vmem:[%s6108_s3 + $0xb0] sm:$0xff] }
   0xc   :  { %6136 = vst [vmem:[#allocation29_spill] sm:$0xff] %v4765_v22  ;;  %6137 = vst [vmem:[#allocation30_spill] sm:$0xff] %v4770_v23  ;;  %v4775_v24 = vld [vmem:[%s6108_s3 + $0xb8] sm:$0xff]  ;;  %v4780_v25 = vld [vmem:[%s6108_s3 + $0xc0] sm:$0xff] }
   0xd   :  { %6138 = vst [vmem:[#allocation31_spill] sm:$0xff] %v4775_v24  ;;  %6139 = vst [vmem:[#allocation32_spill] sm:$0xff] %v4780_v25  ;;  %v4785_v26 = vld [vmem:[%s6108_s3 + $0xc8] sm:$0xff]  ;;  %v4790_v27 = vld [vmem:[%s6108_s3 + $0xd0] sm:$0xff] }
   0xe   :  { %6140 = vst [vmem:[#allocation33_spill] sm:$0xff] %v4785_v26  ;;  %6141 = vst [vmem:[#allocation34_spill] sm:$0xff] %v4790_v27  ;;  %v4795_v28 = vld [vmem:[%s6108_s3 + $0xd8] sm:$0xff]  ;;  %v4800_v29 = vld [vmem:[%s6108_s3 + $0xe0] sm:$0xff] }
   0xf   :  { %6142 = vst [vmem:[#allocation35_spill] sm:$0xff] %v4795_v28  ;;  %6143 = vst [vmem:[#allocation36_spill] sm:$0xff] %v4800_v29  ;;  %v4805_v30 = vld [vmem:[%s6108_s3 + $0xe8] sm:$0xff]  ;;  %v4810_v31 = vld [vmem:[%s6108_s3 + $0xf0] sm:$0xff] }
  0x10   :  { %6144 = vst [vmem:[#allocation37_spill] sm:$0xff] %v4805_v30  ;;  %6145 = vst [vmem:[#allocation38_spill] sm:$0xff] %v4810_v31  ;;  %v4815_v32 = vld [vmem:[%s6108_s3 + $0xf8] sm:$0xff]  ;;  %v4820_v33 = vld [vmem:[%s6108_s3 + $0x100] sm:$0xff] }
  0x11   :  { %6146 = vst [vmem:[#allocation39_spill] sm:$0xff] %v4815_v32  ;;  %6147 = vst [vmem:[#allocation40_spill] sm:$0xff] %v4820_v33  ;;  %v4825_v34 = vld [vmem:[%s6108_s3 + $0x108] sm:$0xff]  ;;  %v4830_v35 = vld [vmem:[%s6108_s3 + $0x110] sm:$0xff] }
  0x12   :  { %6148 = vst [vmem:[#allocation41_spill] sm:$0xff] %v4825_v34  ;;  %6149 = vst [vmem:[#allocation42_spill] sm:$0xff] %v4830_v35  ;;  %v4835_v36 = vld [vmem:[%s6108_s3 + $0x118] sm:$0xff]  ;;  %v4840_v37 = vld [vmem:[%s6108_s3 + $0x120] sm:$0xff] }
  0x13   :  { %6150 = vst [vmem:[#allocation43_spill] sm:$0xff] %v4835_v36  ;;  %6151 = vst [vmem:[#allocation44_spill] sm:$0xff] %v4840_v37  ;;  %v4845_v38 = vld [vmem:[%s6108_s3 + $0x128] sm:$0xff]  ;;  %v4850_v39 = vld [vmem:[%s6108_s3 + $0x130] sm:$0xff] }
  0x14   :  { %6152 = vst [vmem:[#allocation45_spill] sm:$0xff] %v4845_v38  ;;  %6153 = vst [vmem:[#allocation46_spill] sm:$0xff] %v4850_v39  ;;  %v4855_v40 = vld [vmem:[%s6108_s3 + $0x138] sm:$0xff]  ;;  %v4860_v41 = vld [vmem:[%s6108_s3 + $0x140] sm:$0xff] }
  0x15   :  { %6154 = vst [vmem:[#allocation47_spill] sm:$0xff] %v4855_v40  ;;  %6155 = vst [vmem:[#allocation48_spill] sm:$0xff] %v4860_v41  ;;  %v4865_v42 = vld [vmem:[%s6108_s3 + $0x148] sm:$0xff]  ;;  %v4870_v43 = vld [vmem:[%s6108_s3 + $0x150] sm:$0xff] }
  0x16   :  { %6156 = vst [vmem:[#allocation49_spill] sm:$0xff] %v4865_v42  ;;  %6157 = vst [vmem:[#allocation50_spill] sm:$0xff] %v4870_v43  ;;  %v4875_v44 = vld [vmem:[%s6108_s3 + $0x158] sm:$0xff]  ;;  %v4880_v45 = vld [vmem:[%s6108_s3 + $0x160] sm:$0xff] }
  0x17   :  { %6158 = vst [vmem:[#allocation51_spill] sm:$0xff] %v4875_v44  ;;  %6159 = vst [vmem:[#allocation52_spill] sm:$0xff] %v4880_v45  ;;  %v4885_v46 = vld [vmem:[%s6108_s3 + $0x168] sm:$0xff]  ;;  %v4890_v47 = vld [vmem:[%s6108_s3 + $0x170] sm:$0xff] }
  0x18   :  { %6160 = vst [vmem:[#allocation53_spill] sm:$0xff] %v4885_v46  ;;  %6161 = vst [vmem:[#allocation54_spill] sm:$0xff] %v4890_v47  ;;  %v4895_v48 = vld [vmem:[%s6108_s3 + $0x178] sm:$0xff]  ;;  %v4900_v49 = vld [vmem:[%s6108_s3 + $0x180] sm:$0xff] }
  0x19   :  { %6162 = vst [vmem:[#allocation55_spill] sm:$0xff] %v4895_v48  ;;  %6163 = vst [vmem:[#allocation56_spill] sm:$0xff] %v4900_v49  ;;  %v4905_v50 = vld [vmem:[%s6108_s3 + $0x188] sm:$0xff]  ;;  %v4910_v51 = vld [vmem:[%s6108_s3 + $0x190] sm:$0xff] }
  0x1a   :  { %6164 = vst [vmem:[#allocation57_spill] sm:$0xff] %v4905_v50  ;;  %6165 = vst [vmem:[#allocation58_spill] sm:$0xff] %v4910_v51  ;;  %v4915_v52 = vld [vmem:[%s6108_s3 + $0x198] sm:$0xff]  ;;  %v4920_v53 = vld [vmem:[%s6108_s3 + $0x1a0] sm:$0xff] }
  0x1b   :  { %6166 = vst [vmem:[#allocation59_spill] sm:$0xff] %v4915_v52  ;;  %6167 = vst [vmem:[#allocation60_spill] sm:$0xff] %v4920_v53  ;;  %v4925_v54 = vld [vmem:[%s6108_s3 + $0x1a8] sm:$0xff]  ;;  %v4930_v55 = vld [vmem:[%s6108_s3 + $0x1b0] sm:$0xff] }
  0x1c   :  { %6168 = vst [vmem:[#allocation61_spill] sm:$0xff] %v4925_v54  ;;  %6169 = vst [vmem:[#allocation62_spill] sm:$0xff] %v4930_v55  ;;  %v4935_v56 = vld [vmem:[%s6108_s3 + $0x1b8] sm:$0xff]  ;;  %v4940_v57 = vld [vmem:[%s6108_s3 + $0x1c0] sm:$0xff] }
  0x1d   :  { %6170 = vst [vmem:[#allocation63_spill] sm:$0xff] %v4935_v56  ;;  %6171 = vst [vmem:[#allocation64_spill] sm:$0xff] %v4940_v57  ;;  %v4945_v58 = vld [vmem:[%s6108_s3 + $0x1c8] sm:$0xff]  ;;  %v4950_v59 = vld [vmem:[%s6108_s3 + $0x1d0] sm:$0xff] }
  0x1e   :  { %6172 = vst [vmem:[#allocation65_spill] sm:$0xff] %v4945_v58  ;;  %6173 = vst [vmem:[#allocation66_spill] sm:$0xff] %v4950_v59  ;;  %v4955_v60 = vld [vmem:[%s6108_s3 + $0x1d8] sm:$0xff]  ;;  %v4960_v61 = vld [vmem:[%s6108_s3 + $0x1e0] sm:$0xff] }
  0x1f   :  { %6174 = vst [vmem:[#allocation67_spill] sm:$0xff] %v4955_v60  ;;  %6175 = vst [vmem:[#allocation68_spill] sm:$0xff] %v4960_v61  ;;  %v4965_v62 = vld [vmem:[%s6108_s3 + $0x1e8] sm:$0xff]  ;;  %v4970_v63 = vld [vmem:[%s6108_s3 + $0x1f0] sm:$0xff] }
  0x20   :  { %6176 = vst [vmem:[#allocation69_spill] sm:$0xff] %v4965_v62  ;;  %6177 = vst [vmem:[#allocation70_spill] sm:$0xff] %v4970_v63  ;;  %v4975_v0 = vld [vmem:[%s6108_s3 + $0x1f8] sm:$0xff]  ;;  %v4980_v56 = vld [vmem:[%s6108_s3 + $0x200] sm:$0xff] }
  0x21   :  { %6178 = vst [vmem:[#allocation71_spill] sm:$0xff] %v4975_v0  ;;  %6179 = vst [vmem:[#allocation72_spill] sm:$0xff] %v4980_v56  ;;  %v4985_v55 = vld [vmem:[%s6108_s3 + $0x208] sm:$0xff]  ;;  %v4990_v54 = vld [vmem:[%s6108_s3 + $0x210] sm:$0xff] }
  0x22   :  { %6180 = vst [vmem:[#allocation73_spill] sm:$0xff] %v4985_v55  ;;  %6181 = vst [vmem:[#allocation74_spill] sm:$0xff] %v4990_v54  ;;  %v4995_v53 = vld [vmem:[%s6108_s3 + $0x218] sm:$0xff]  ;;  %v5000_v52 = vld [vmem:[%s6108_s3 + $0x220] sm:$0xff] }
  0x23   :  { %6182 = vst [vmem:[#allocation75_spill] sm:$0xff] %v4995_v53  ;;  %6183 = vst [vmem:[#allocation76_spill] sm:$0xff] %v5000_v52  ;;  %v5005_v56 = vld [vmem:[%s6108_s3 + $0x228] sm:$0xff]  ;;  %v5010_v55 = vld [vmem:[%s6108_s3 + $0x230] sm:$0xff] }
  0x24   :  { %6184 = vst [vmem:[#allocation77_spill] sm:$0xff] %v5005_v56  ;;  %6185 = vst [vmem:[#allocation78_spill] sm:$0xff] %v5010_v55  ;;  %v5015_v54 = vld [vmem:[%s6108_s3 + $0x238] sm:$0xff]  ;;  %v5020_v53 = vld [vmem:[%s6108_s3 + $0x240] sm:$0xff] }
  0x25   :  { %6186 = vst [vmem:[#allocation79_spill] sm:$0xff] %v5015_v54  ;;  %6187 = vst [vmem:[#allocation80_spill] sm:$0xff] %v5020_v53  ;;  %v5025_v52 = vld [vmem:[%s6108_s3 + $0x248] sm:$0xff]  ;;  %v5030_v56 = vld [vmem:[%s6108_s3 + $0x250] sm:$0xff] }
  0x26   :  { %6188 = vst [vmem:[#allocation81_spill] sm:$0xff] %v5025_v52  ;;  %6189 = vst [vmem:[#allocation82_spill] sm:$0xff] %v5030_v56  ;;  %v5035_v55 = vld [vmem:[%s6108_s3 + $0x258] sm:$0xff]  ;;  %v5040_v54 = vld [vmem:[%s6108_s3 + $0x260] sm:$0xff] }
  0x27   :  { %6190 = vst [vmem:[#allocation83_spill] sm:$0xff] %v5035_v55  ;;  %6191 = vst [vmem:[#allocation84_spill] sm:$0xff] %v5040_v54  ;;  %v5045_v51 = vld [vmem:[%s6108_s3 + $0x268] sm:$0xff]  ;;  %v5050_v50 = vld [vmem:[%s6108_s3 + $0x270] sm:$0xff] }
  0x28   :  { %6192 = vst [vmem:[#allocation85_spill] sm:$0xff] %v5045_v51  ;;  %6193 = vst [vmem:[#allocation86_spill] sm:$0xff] %v5050_v50  ;;  %v5055_v49 = vld [vmem:[%s6108_s3 + $0x278] sm:$0xff]  ;;  %v5060_v40 = vld [vmem:[%s6108_s3 + $0x280] sm:$0xff] }
  0x29   :  { %6194 = vst [vmem:[#allocation87_spill] sm:$0xff] %v5055_v49  ;;  %6195 = vst [vmem:[#allocation88_spill] sm:$0xff] %v5060_v40  ;;  %v5065_v39 = vld [vmem:[%s6108_s3 + $0x288] sm:$0xff]  ;;  %v5070_v38 = vld [vmem:[%s6108_s3 + $0x290] sm:$0xff] }
  0x2a   :  { %6196 = vst [vmem:[#allocation89_spill] sm:$0xff] %v5065_v39  ;;  %6197 = vst [vmem:[#allocation90_spill] sm:$0xff] %v5070_v38  ;;  %v5075_v37 = vld [vmem:[%s6108_s3 + $0x298] sm:$0xff]  ;;  %v5080_v36 = vld [vmem:[%s6108_s3 + $0x2a0] sm:$0xff] }
  0x2b   :  { %6198 = vst [vmem:[#allocation91_spill] sm:$0xff] %v5075_v37  ;;  %6199 = vst [vmem:[#allocation92_spill] sm:$0xff] %v5080_v36  ;;  %v5085_v40 = vld [vmem:[%s6108_s3 + $0x2a8] sm:$0xff]  ;;  %v5090_v39 = vld [vmem:[%s6108_s3 + $0x2b0] sm:$0xff] }
  0x2c   :  { %6200 = vst [vmem:[#allocation93_spill] sm:$0xff] %v5085_v40  ;;  %6201 = vst [vmem:[#allocation94_spill] sm:$0xff] %v5090_v39  ;;  %v5095_v38 = vld [vmem:[%s6108_s3 + $0x2b8] sm:$0xff]  ;;  %v5100_v37 = vld [vmem:[%s6108_s3 + $0x2c0] sm:$0xff] }
  0x2d   :  { %6202 = vst [vmem:[#allocation95_spill] sm:$0xff] %v5095_v38  ;;  %6203 = vst [vmem:[#allocation96_spill] sm:$0xff] %v5100_v37  ;;  %v5105_v36 = vld [vmem:[%s6108_s3 + $0x2c8] sm:$0xff]  ;;  %v5110_v40 = vld [vmem:[%s6108_s3 + $0x2d0] sm:$0xff] }
  0x2e   :  { %6204 = vst [vmem:[#allocation97_spill] sm:$0xff] %v5105_v36  ;;  %6205 = vst [vmem:[#allocation98_spill] sm:$0xff] %v5110_v40  ;;  %v5115_v39 = vld [vmem:[%s6108_s3 + $0x2d8] sm:$0xff]  ;;  %v5120_v38 = vld [vmem:[%s6108_s3 + $0x2e0] sm:$0xff] }
  0x2f   :  { %6206 = vst [vmem:[#allocation99_spill] sm:$0xff] %v5115_v39  ;;  %6207 = vst [vmem:[#allocation100_spill] sm:$0xff] %v5120_v38  ;;  %v5125_v35 = vld [vmem:[%s6108_s3 + $0x2e8] sm:$0xff]  ;;  %v5130_v34 = vld [vmem:[%s6108_s3 + $0x2f0] sm:$0xff] }
  0x30   :  { %6208 = vst [vmem:[#allocation101_spill] sm:$0xff] %v5125_v35  ;;  %6209 = vst [vmem:[#allocation102_spill] sm:$0xff] %v5130_v34  ;;  %v5135_v33 = vld [vmem:[%s6108_s3 + $0x2f8] sm:$0xff]  ;;  %v5140_v24 = vld [vmem:[%s6108_s3 + $0x300] sm:$0xff] }
  0x31   :  { %6210 = vst [vmem:[#allocation103_spill] sm:$0xff] %v5135_v33  ;;  %6211 = vst [vmem:[#allocation104_spill] sm:$0xff] %v5140_v24  ;;  %v5145_v23 = vld [vmem:[%s6108_s3 + $0x308] sm:$0xff]  ;;  %v5150_v22 = vld [vmem:[%s6108_s3 + $0x310] sm:$0xff] }
  0x32   :  { %6212 = vst [vmem:[#allocation105_spill] sm:$0xff] %v5145_v23  ;;  %6213 = vst [vmem:[#allocation106_spill] sm:$0xff] %v5150_v22  ;;  %v5155_v21 = vld [vmem:[%s6108_s3 + $0x318] sm:$0xff]  ;;  %v5160_v20 = vld [vmem:[%s6108_s3 + $0x320] sm:$0xff] }
  0x33   :  { %6214 = vst [vmem:[#allocation107_spill] sm:$0xff] %v5155_v21  ;;  %6215 = vst [vmem:[#allocation108_spill] sm:$0xff] %v5160_v20  ;;  %v5165_v24 = vld [vmem:[%s6108_s3 + $0x328] sm:$0xff]  ;;  %v5170_v23 = vld [vmem:[%s6108_s3 + $0x330] sm:$0xff] }
  0x34   :  { %6216 = vst [vmem:[#allocation109_spill] sm:$0xff] %v5165_v24  ;;  %6217 = vst [vmem:[#allocation110_spill] sm:$0xff] %v5170_v23  ;;  %v5175_v22 = vld [vmem:[%s6108_s3 + $0x338] sm:$0xff]  ;;  %v5180_v21 = vld [vmem:[%s6108_s3 + $0x340] sm:$0xff] }
  0x35   :  { %6218 = vst [vmem:[#allocation111_spill] sm:$0xff] %v5175_v22  ;;  %6219 = vst [vmem:[#allocation112_spill] sm:$0xff] %v5180_v21  ;;  %v5185_v20 = vld [vmem:[%s6108_s3 + $0x348] sm:$0xff]  ;;  %v5190_v24 = vld [vmem:[%s6108_s3 + $0x350] sm:$0xff] }
  0x36   :  { %6220 = vst [vmem:[#allocation113_spill] sm:$0xff] %v5185_v20  ;;  %6221 = vst [vmem:[#allocation114_spill] sm:$0xff] %v5190_v24  ;;  %v5195_v23 = vld [vmem:[%s6108_s3 + $0x358] sm:$0xff]  ;;  %v5200_v22 = vld [vmem:[%s6108_s3 + $0x360] sm:$0xff] }
  0x37   :  { %6222 = vst [vmem:[#allocation115_spill] sm:$0xff] %v5195_v23  ;;  %6223 = vst [vmem:[#allocation116_spill] sm:$0xff] %v5200_v22  ;;  %v5205_v19 = vld [vmem:[%s6108_s3 + $0x368] sm:$0xff]  ;;  %v5210_v18 = vld [vmem:[%s6108_s3 + $0x370] sm:$0xff] }
  0x38   :  { %6224 = vst [vmem:[#allocation117_spill] sm:$0xff] %v5205_v19  ;;  %6225 = vst [vmem:[#allocation118_spill] sm:$0xff] %v5210_v18  ;;  %v5215_v17 = vld [vmem:[%s6108_s3 + $0x378] sm:$0xff]  ;;  %v5220_v8 = vld [vmem:[%s6108_s3 + $0x380] sm:$0xff] }
  0x39   :  { %6226 = vst [vmem:[#allocation119_spill] sm:$0xff] %v5215_v17  ;;  %6227 = vst [vmem:[#allocation120_spill] sm:$0xff] %v5220_v8  ;;  %v5225_v7 = vld [vmem:[%s6108_s3 + $0x388] sm:$0xff]  ;;  %v5230_v6 = vld [vmem:[%s6108_s3 + $0x390] sm:$0xff] }
  0x3a   :  { %6228 = vst [vmem:[#allocation121_spill] sm:$0xff] %v5225_v7  ;;  %6229 = vst [vmem:[#allocation122_spill] sm:$0xff] %v5230_v6  ;;  %v5235_v5 = vld [vmem:[%s6108_s3 + $0x398] sm:$0xff]  ;;  %v5240_v4 = vld [vmem:[%s6108_s3 + $0x3a0] sm:$0xff] }
  0x3b   :  { %6230 = vst [vmem:[#allocation123_spill] sm:$0xff] %v5235_v5  ;;  %6231 = vst [vmem:[#allocation124_spill] sm:$0xff] %v5240_v4  ;;  %v5245_v8 = vld [vmem:[%s6108_s3 + $0x3a8] sm:$0xff]  ;;  %v5250_v7 = vld [vmem:[%s6108_s3 + $0x3b0] sm:$0xff] }
  0x3c   :  { %6232 = vst [vmem:[#allocation125_spill] sm:$0xff] %v5245_v8  ;;  %6233 = vst [vmem:[#allocation126_spill] sm:$0xff] %v5250_v7  ;;  %v5255_v6 = vld [vmem:[%s6108_s3 + $0x3b8] sm:$0xff]  ;;  %v5260_v5 = vld [vmem:[%s6108_s3 + $0x3c0] sm:$0xff] }
  0x3d   :  { %6234 = vst [vmem:[#allocation127_spill] sm:$0xff] %v5255_v6  ;;  %6235 = vst [vmem:[#allocation128_spill] sm:$0xff] %v5260_v5  ;;  %v5265_v4 = vld [vmem:[%s6108_s3 + $0x3c8] sm:$0xff]  ;;  %v5270_v8 = vld [vmem:[%s6108_s3 + $0x3d0] sm:$0xff] }
  0x3e   :  { %6236 = vst [vmem:[#allocation129_spill] sm:$0xff] %v5265_v4  ;;  %6237 = vst [vmem:[#allocation130_spill] sm:$0xff] %v5270_v8  ;;  %v5275_v7 = vld [vmem:[%s6108_s3 + $0x3d8] sm:$0xff]  ;;  %v5280_v6 = vld [vmem:[%s6108_s3 + $0x3e0] sm:$0xff] }
  0x3f   :  { %6238 = vst [vmem:[#allocation131_spill] sm:$0xff] %v5275_v7  ;;  %6239 = vst [vmem:[#allocation132_spill] sm:$0xff] %v5280_v6  ;;  %v5285_v3 = vld [vmem:[%s6108_s3 + $0x3e8] sm:$0xff]  ;;  %v5290_v2 = vld [vmem:[%s6108_s3 + $0x3f0] sm:$0xff] }
  0x40   :  { %6240 = vst [vmem:[#allocation133_spill] sm:$0xff] %v5285_v3  ;;  %6241 = vst [vmem:[#allocation134_spill] sm:$0xff] %v5290_v2  ;;  %v5295_v1 = vld [vmem:[%s6108_s3 + $0x3f8] sm:$0xff] }
  0x41   :  { %6242 = vst [vmem:[#allocation135_spill] sm:$0xff] %v5295_v1 }
  0x42   :  { %322 = vsyncadd [#allocation4], 16384  ;;  %v5300_v6 = vld [vmem:[%s6110_s5] sm:$0xff]  ;;  %v5305_v3 = vld [vmem:[%s6110_s5 + $0x8] sm:$0xff] }
  0x43   :  { %v5310_v2 = vld [vmem:[%s6110_s5 + $0x10] sm:$0xff]  ;;  %v5315_v1 = vld [vmem:[%s6110_s5 + $0x18] sm:$0xff]  ;;  %v5320_v7 = vld [vmem:[%s6110_s5 + $0x20] sm:$0xff] }
  0x44   :  { %v5325_v8 = vld [vmem:[%s6110_s5 + $0x28] sm:$0xff]  ;;  %v5330_v4 = vld [vmem:[%s6110_s5 + $0x30] sm:$0xff]  ;;  %v5335_v5 = vld [vmem:[%s6110_s5 + $0x38] sm:$0xff] }
  0x45   :  { %v5340_v17 = vld [vmem:[%s6110_s5 + $0x40] sm:$0xff]  ;;  %v5345_v18 = vld [vmem:[%s6110_s5 + $0x48] sm:$0xff]  ;;  %v5350_v19 = vld [vmem:[%s6110_s5 + $0x50] sm:$0xff] }
  0x46   :  { %v5355_v22 = vld [vmem:[%s6110_s5 + $0x58] sm:$0xff]  ;;  %v5360_v23 = vld [vmem:[%s6110_s5 + $0x60] sm:$0xff]  ;;  %v5365_v24 = vld [vmem:[%s6110_s5 + $0x68] sm:$0xff] }
  0x47   :  { %v5370_v20 = vld [vmem:[%s6110_s5 + $0x70] sm:$0xff]  ;;  %v5375_v21 = vld [vmem:[%s6110_s5 + $0x78] sm:$0xff] }
  0x48   :  { %6243 = vst [vmem:[#allocation136_spill] sm:$0xff] %v5375_v21 }
  0x49   :  { %395 = vsyncadd [#allocation4 + $0x1], 2048  ;;  %v412_v33 = vld [vmem:[%s6106_s1] sm:$0xff]  ;;  %v413_v34 = vld [vmem:[%s6106_s1 + $0x8] sm:$0xff]  ;;  %vm421_vm0 = vcmask 261120   ;;  %vm663_vm2 = vcmask 523264  }
  0x4a   :  { %v4241_v35 = vpack.c.bf16 %v413_v34, %v412_v33  ;;  %v414_v38 = vld [vmem:[%s6106_s1 + $0x10] sm:$0xff]  ;;  %v415_v39 = vld [vmem:[%s6106_s1 + $0x18] sm:$0xff]  ;;  %v396_v40 = vld [vmem:[%s6105_s0] sm:$0xff] }
  0x4b   :  { %v4245_v48 = vpack.c.bf16 %v415_v39, %v414_v38  ;;  %3737 = vmatprep.mubr.msk.f32.mxu0 %vm421_vm0, %v396_v40  ;;  %v397_v33 = vld [vmem:[%s6105_s0 + $0x8] sm:$0xff]  ;;  %v398_v34 = vld [vmem:[%s6105_s0 + $0x10] sm:$0xff]  ;;  %v399_v38 = vld [vmem:[%s6105_s0 + $0x18] sm:$0xff] }
  0x4c   :  { %4242 = vmatprep.subr.bf16.mxu0 %v4241_v35  ;;  %v401_v39 = vld [vmem:[%s6105_s0 + $0x28] sm:$0xff]  ;;  %v402_v40 = vld [vmem:[%s6105_s0 + $0x30] sm:$0xff] }
  0x4d   :  { %4244 = vmatpush3.bf16.msra.mxu0 %v4241_v35  ;;  %v400_v35 = vld [vmem:[%s6105_s0 + $0x20] sm:$0xff] }
  0x4e   :  { %4246 = vmatprep.subr.bf16.mxu0 %v4245_v48 }
  0x51   :  { %4248 = vmatpush3.bf16.msra.mxu0 %v4245_v48  ;;  %v403_v48 = vld [vmem:[%s6105_s0 + $0x38] sm:$0xff] }
  0x54   :  { %3738 = vmatmul.mubr.msk.f32.vlgmr.msra.gmra.mrb[0].mxu0 %vm421_vm0, %v397_v33  ;;  %v404_v33 = vld [vmem:[%s6105_s0 + $0x40] sm:$0xff] }
  0x55   :  { %3740 = vmatprep.mubr.msk.f32.mxu0 %vm421_vm0, %v398_v34  ;;  %v405_v34 = vld [vmem:[%s6105_s0 + $0x48] sm:$0xff] }
  0x58   :  { %3741 = vmatmul.mubr.msk.f32.gmra.mrb[2].mxu0 %vm421_vm0, %v399_v38  ;;  %v406_v38 = vld [vmem:[%s6105_s0 + $0x50] sm:$0xff] }
  0x59   :  { %3743 = vmatprep.mubr.msk.f32.mxu0 %vm421_vm0, %v400_v35  ;;  %v407_v35 = vld [vmem:[%s6105_s0 + $0x58] sm:$0xff] }
  0x5c   :  { %3744 = vmatmul.mubr.msk.f32.gmra.mrb[4].mxu0 %vm421_vm0, %v401_v39  ;;  %v408_v39 = vld [vmem:[%s6105_s0 + $0x60] sm:$0xff] }
  0x5d   :  { %3746 = vmatprep.mubr.msk.f32.mxu0 %vm421_vm0, %v402_v40  ;;  %v409_v40 = vld [vmem:[%s6105_s0 + $0x68] sm:$0xff] }
  0x60   :  { %3747 = vmatmul.mubr.msk.f32.gmra.mrb[6].mxu0 %vm421_vm0, %v403_v48  ;;  %v410_v48 = vld [vmem:[%s6105_s0 + $0x70] sm:$0xff] }
  0x61   :  { %3749 = vmatprep.mubr.msk.f32.mxu0 %vm421_vm0, %v404_v33  ;;  %v411_v33 = vld [vmem:[%s6105_s0 + $0x78] sm:$0xff] }
  0x64   :  { %3750 = vmatmul.mubr.msk.f32.gmra.mrb[8].mxu0 %vm421_vm0, %v405_v34  ;;  %v6114_v34 = vlaneseq }
  0x65   :  { %3752 = vmatprep.mubr.msk.f32.mxu0 %vm421_vm0, %v406_v38 }
  0x66   :  { %v5454_v38 = vshrl.u32 %v6114_v34, 7 }
  0x68   :  { %3753 = vmatmul.mubr.msk.f32.gmra.mrb[10].mxu0 %vm421_vm0, %v407_v35  ;;  %v6115_v35 = vsub.s32 0, %v5454_v38 }
  0x69   :  { %3755 = vmatprep.mubr.msk.f32.mxu0 %vm421_vm0, %v408_v39  ;;  %v5460_v39 = vld [vmem:[%s6107_s2] sm:$0x7] }
  0x6c   :  { %3756 = vmatmul.mubr.msk.f32.gmra.mrb[12].mxu0 %vm421_vm0, %v409_v40  ;;  %v5465_v40 = vrot.slane %v5460_v39, %v6115_v35 }
  0x6d   :  { %3758 = vmatprep.mubr.msk.f32.mxu0 %vm421_vm0, %v410_v48 }
  0x70   :  { %3759 = vmatmul.mubr.msk.f32.gmra.mrb[14].mxu0 %vm421_vm0, %v411_v33 }
 0x127   :  { %v3739_v48 = vpop.f32.mrb[0].mxu0 }
 0x128   :  { %v542_v47 = vadd.f32 %v3739_v48, %v5465_v40  ;;  %v536_v33 = vpop.f32.mrb[1].mxu0 }
 0x129   :  { %v537_v46 = vadd.f32 %v536_v33, %v5465_v40 }
 0x12a   :  { %vm616_vm1 = vcmp.gt.f32.partialorder %v542_v47, 0.0  ;;  %v632_v34 = vmul.f32 0.2, %v542_v47 }
 0x12b   :  { %vm615_vm3 = vcmp.gt.f32.partialorder %v537_v46, 0.0  ;;  %v631_v45 = vmul.f32 0.2, %v537_v46  ;;  %v3742_v44 = vpop.f32.mrb[2].mxu0 }
 0x12c   :  { %v5469_v43 = vsel %vm616_vm1, %v542_v47, %v632_v34  ;;  %v552_v36 = vadd.f32 %v3742_v44, %v5465_v40  ;;  %v546_v37 = vpop.f32.mrb[3].mxu0 }
 0x12d   :  { %v665_v35 = vsel %vm663_vm2, %v5469_v43, 0.0  ;;  %v5474_v49 = vsel %vm615_vm3, %v537_v46, %v631_v45  ;;  %v547_v48 = vadd.f32 %v546_v37, %v5465_v40 }
 0x12e   :  { %v664_v33 = vsel %vm663_vm2, %v5474_v49, 0.0  ;;  %vm618_vm4 = vcmp.gt.f32.partialorder %v552_v36, 0.0  ;;  %v634_v50 = vmul.f32 0.2, %v552_v36 }
 0x12f   :  { %v666_v51 = vadd.f32 %v665_v35, %v664_v33  ;;  %vm617_vm5 = vcmp.gt.f32.partialorder %v547_v48, 0.0  ;;  %v633_v54 = vmul.f32 0.2, %v547_v48  ;;  %v3745_v47 = vpop.f32.mrb[4].mxu0 }
 0x130   :  { %v562_v34 = vadd.f32 %v3745_v47, %v5465_v40  ;;  %v556_v44 = vpop.f32.mrb[5].mxu0  ;;  %v5480_v55 = vsel %vm618_vm4, %v552_v36, %v634_v50 }
 0x131   :  { %v5482_v56 = vsel %vm617_vm5, %v547_v48, %v633_v54  ;;  %v557_v45 = vadd.f32 %v556_v44, %v5465_v40  ;;  %v669_v41 = vsel %vm663_vm2, %v5480_v55, 0.0 }
 0x132   :  { %v667_v37 = vsel %vm663_vm2, %v5482_v56, 0.0  ;;  %vm620_vm6 = vcmp.gt.f32.partialorder %v562_v34, 0.0  ;;  %v636_v46 = vmul.f32 0.2, %v562_v34 }
 0x133   :  { %v668_v42 = vadd.f32 %v667_v37, %v666_v51  ;;  %vm619_vm7 = vcmp.gt.f32.partialorder %v557_v45, 0.0  ;;  %v635_v35 = vmul.f32 0.2, %v557_v45  ;;  %v3748_v33 = vpop.f32.mrb[6].mxu0 }
 0x134   :  { %v572_v47 = vadd.f32 %v3748_v33, %v5465_v40  ;;  %v566_v36 = vpop.f32.mrb[7].mxu0  ;;  %v5490_v50 = vsel %vm620_vm6, %v562_v34, %v636_v46 }
 0x135   :  { %v5492_v54 = vsel %vm619_vm7, %v557_v45, %v635_v35  ;;  %v670_v48 = vadd.f32 %v669_v41, %v668_v42  ;;  %v567_v44 = vadd.f32 %v566_v36, %v5465_v40  ;;  %v673_v33 = vsel %vm663_vm2, %v5490_v50, 0.0 }
 0x136   :  { %v671_v32 = vsel %vm663_vm2, %v5492_v54, 0.0  ;;  %vm622_vm8 = vcmp.gt.f32.partialorder %v572_v47, 0.0  ;;  %v638_v51 = vmul.f32 0.2, %v572_v47 }
 0x137   :  { %v672_v37 = vadd.f32 %v671_v32, %v670_v48  ;;  %vm621_vm9 = vcmp.gt.f32.partialorder %v567_v44, 0.0  ;;  %v637_v31 = vmul.f32 0.2, %v567_v44  ;;  %v3751_v30 = vpop.f32.mrb[8].mxu0 }
 0x138   :  { %v582_v34 = vadd.f32 %v3751_v30, %v5465_v40  ;;  %v576_v46 = vpop.f32.mrb[9].mxu0  ;;  %v5500_v45 = vsel %vm622_vm8, %v572_v47, %v638_v51 }
 0x139   :  { %v5502_v41 = vsel %vm621_vm9, %v567_v44, %v637_v31  ;;  %v674_v42 = vadd.f32 %v673_v33, %v672_v37  ;;  %v577_v35 = vadd.f32 %v576_v46, %v5465_v40  ;;  %v677_v30 = vsel %vm663_vm2, %v5500_v45, 0.0 }
 0x13a   :  { %v675_v36 = vsel %vm663_vm2, %v5502_v41, 0.0  ;;  %vm624_vm10 = vcmp.gt.f32.partialorder %v582_v34, 0.0  ;;  %v640_v32 = vmul.f32 0.2, %v582_v34 }
 0x13b   :  { %v676_v48 = vadd.f32 %v675_v36, %v674_v42  ;;  %vm623_vm11 = vcmp.gt.f32.partialorder %v577_v35, 0.0  ;;  %v639_v29 = vmul.f32 0.2, %v577_v35  ;;  %v3754_v28 = vpop.f32.mrb[10].mxu0 }
 0x13c   :  { %v592_v47 = vadd.f32 %v3754_v28, %v5465_v40  ;;  %v586_v51 = vpop.f32.mrb[11].mxu0  ;;  %v656_v31 = vsel %vm624_vm10, %v582_v34, %v640_v32 }
 0x13d   :  { %v655_v44 = vsel %vm623_vm11, %v577_v35, %v639_v29  ;;  %v678_v37 = vadd.f32 %v677_v30, %v676_v48  ;;  %v587_v33 = vadd.f32 %v586_v51, %v5465_v40  ;;  %v681_v53 = vsel %vm663_vm2, %v656_v31, 0.0 }
 0x13e   :  { %v679_v46 = vsel %vm663_vm2, %v655_v44, 0.0  ;;  %vm626_vm12 = vcmp.gt.f32.partialorder %v592_v47, 0.0  ;;  %v642_v27 = vmul.f32 0.2, %v592_v47 }
 0x13f   :  { %v680_v52 = vadd.f32 %v679_v46, %v678_v37  ;;  %vm625_vm13 = vcmp.gt.f32.partialorder %v587_v33, 0.0  ;;  %v641_v42 = vmul.f32 0.2, %v587_v33  ;;  %v3757_v36 = vpop.f32.mrb[12].mxu0 }
 0x140   :  { %v602_v26 = vadd.f32 %v3757_v36, %v5465_v40  ;;  %v596_v25 = vpop.f32.mrb[13].mxu0  ;;  %v658_v28 = vsel %vm626_vm12, %v592_v47, %v642_v27 }
 0x141   :  { %v657_v0 = vsel %vm625_vm13, %v587_v33, %v641_v42  ;;  %v682_v34 = vadd.f32 %v681_v53, %v680_v52  ;;  %v597_v29 = vadd.f32 %v596_v25, %v5465_v40  ;;  %v685_v37 = vsel %vm663_vm2, %v658_v28, 0.0 }
 0x142   :  { %v683_v35 = vsel %vm663_vm2, %v657_v0, 0.0  ;;  %vm628_vm14 = vcmp.gt.f32.partialorder %v602_v26, 0.0  ;;  %v644_v32 = vmul.f32 0.2, %v602_v26 }
 0x143   :  { %v684_v48 = vadd.f32 %v683_v35, %v682_v34  ;;  %vm627_vm15 = vcmp.gt.f32.partialorder %v597_v29, 0.0  ;;  %v643_v30 = vmul.f32 0.2, %v597_v29  ;;  %v3760_v51 = vpop.f32.mrb[14].mxu0 }
 0x144   :  { %v612_v46 = vadd.f32 %v3760_v51, %v5465_v40  ;;  %v606_v63 = vpop.f32.mrb[15].mxu0  ;;  %v660_v36 = vsel %vm628_vm14, %v602_v26, %v644_v32 }
 0x145   :  { %v659_v62 = vsel %vm627_vm15, %v597_v29, %v643_v30  ;;  %v686_v27 = vadd.f32 %v685_v37, %v684_v48  ;;  %v607_v52 = vadd.f32 %v606_v63, %v5465_v40  ;;  %v689_v42 = vsel %vm663_vm2, %v660_v36, 0.0 }
 0x146   :  { %v687_v25 = vsel %vm663_vm2, %v659_v62, 0.0  ;;  %vm630_vm0 = vcmp.gt.f32.partialorder %v612_v46, 0.0  ;;  %v646_v53 = vmul.f32 0.2, %v612_v46 }
 0x147   :  { %v688_v47 = vadd.f32 %v687_v25, %v686_v27  ;;  %vm629_vm1 = vcmp.gt.f32.partialorder %v607_v52, 0.0  ;;  %v645_v33 = vmul.f32 0.2, %v607_v52 }
 0x148   :  { %v662_v34 = vsel %vm630_vm0, %v612_v46, %v646_v53 }
 0x149   :  { %v661_v35 = vsel %vm629_vm1, %v607_v52, %v645_v33  ;;  %v690_v61 = vadd.f32 %v689_v42, %v688_v47  ;;  %v693_v26 = vsel %vm663_vm2, %v662_v34, 0.0 }
 0x14a   :  { %v691_v51 = vsel %vm663_vm2, %v661_v35, 0.0 }
 0x14b   :  { %v692_v60 = vadd.f32 %v691_v51, %v690_v61 }
 0x14d   :  { %v694_v29 = vadd.f32 %v693_v26, %v692_v60 }
 0x14f   :  { %v695_v32 = vrot.slane %v694_v29, 4 }
 0x151   :  { %v696_v63 = vadd.f32 %v695_v32, %v694_v29 }
 0x153   :  { %v697_v40 = vrot.slane %v696_v63, 2 }
 0x155   :  { %v698_v48 = vadd.f32 %v697_v40, %v696_v63 }
 0x157   :  { %v699_v30 = vrot.slane %v698_v48, 1 }
 0x159   :  { %v700_v37 = vadd.f32 %v699_v30, %v698_v48 }
 0x15b   :  { %v702_v27 = vmul.f32 0.0078125, %v700_v37 }
 0x15d   :  { %v5524_v25 = vsub.f32 %v5474_v49, %v702_v27  ;;  %v5527_v46 = vsub.f32 %v5469_v43, %v702_v27  ;;  %v5530_v52 = vsub.f32 %v5482_v56, %v702_v27  ;;  %v5533_v61 = vsub.f32 %v5480_v55, %v702_v27 }
 0x15e   :  { %v5536_v60 = vsub.f32 %v5492_v54, %v702_v27  ;;  %v5539_v53 = vsub.f32 %v5490_v50, %v702_v27  ;;  %v5542_v47 = vsub.f32 %v5502_v41, %v702_v27  ;;  %v5545_v49 = vsub.f32 %v5500_v45, %v702_v27 }
 0x15f   :  { %v5547_v43 = vsub.f32 %v655_v44, %v702_v27  ;;  %v5549_v33 = vsub.f32 %v656_v31, %v702_v27  ;;  %v5551_v56 = vsub.f32 %v657_v0, %v702_v27  ;;  %v5553_v55 = vsub.f32 %v658_v28, %v702_v27 }
 0x160   :  { %v5555_v42 = vsub.f32 %v659_v62, %v702_v27  ;;  %v5557_v54 = vsub.f32 %v660_v36, %v702_v27  ;;  %v5559_v50 = vsub.f32 %v661_v35, %v702_v27  ;;  %v5561_v51 = vsub.f32 %v662_v34, %v702_v27 }
 0x161   :  { %v719_v45 = vmul.f32 %v5524_v25, %v5524_v25  ;;  %v720_v41 = vmul.f32 %v5527_v46, %v5527_v46  ;;  %v721_v0 = vmul.f32 %v5530_v52, %v5530_v52  ;;  %v728_v31 = vmul.f32 %v5549_v33, %v5549_v33 }
 0x162   :  { %v729_v62 = vmul.f32 %v5551_v56, %v5551_v56  ;;  %v722_v44 = vmul.f32 %v5533_v61, %v5533_v61  ;;  %v730_v28 = vmul.f32 %v5553_v55, %v5553_v55  ;;  %v731_v36 = vmul.f32 %v5555_v42, %v5555_v42 }
 0x163   :  { %v732_v34 = vmul.f32 %v5557_v54, %v5557_v54  ;;  %v733_v35 = vmul.f32 %v5559_v50, %v5559_v50  ;;  %v734_v26 = vmul.f32 %v5561_v51, %v5561_v51  ;;  %v735_v29 = vsel %vm663_vm2, %v719_v45, 0.0 }
 0x164   :  { %v736_v32 = vsel %vm663_vm2, %v720_v41, 0.0  ;;  %v723_v40 = vmul.f32 %v5536_v60, %v5536_v60  ;;  %v738_v48 = vsel %vm663_vm2, %v721_v0, 0.0  ;;  %v752_v30 = vsel %vm663_vm2, %v728_v31, 0.0 }
 0x165   :  { %v737_v63 = vadd.f32 %v736_v32, %v735_v29  ;;  %v754_v37 = vsel %vm663_vm2, %v729_v62, 0.0  ;;  %v756_v59 = vsel %vm663_vm2, %v730_v28, 0.0  ;;  %v758_v58 = vsel %vm663_vm2, %v731_v36, 0.0 }
 0x166   :  { %v760_v57 = vsel %vm663_vm2, %v732_v34, 0.0  ;;  %v724_v45 = vmul.f32 %v5539_v53, %v5539_v53  ;;  %v740_v41 = vsel %vm663_vm2, %v722_v44, 0.0  ;;  %v762_v29 = vsel %vm663_vm2, %v733_v35, 0.0 }
 0x167   :  { %v739_v27 = vadd.f32 %v738_v48, %v737_v63  ;;  %v764_v0 = vsel %vm663_vm2, %v734_v26, 0.0  ;;  %v725_v31 = vmul.f32 %v5542_v47, %v5542_v47  ;;  %v742_v62 = vsel %vm663_vm2, %v723_v40, 0.0 }
 0x168   :  { %v726_v36 = vmul.f32 %v5545_v49, %v5545_v49  ;;  %v744_v34 = vsel %vm663_vm2, %v724_v45, 0.0  ;;  %v727_v44 = vmul.f32 %v5547_v43, %v5547_v43 }
 0x169   :  { %v741_v32 = vadd.f32 %v740_v41, %v739_v27  ;;  %v746_v35 = vsel %vm663_vm2, %v725_v31, 0.0 }
 0x16a   :  { %v748_v26 = vsel %vm663_vm2, %v726_v36, 0.0  ;;  %v750_v41 = vsel %vm663_vm2, %v727_v44, 0.0  ;;  %v778_v36 = vsub.s32 1, %v5454_v38 }
 0x16b   :  { %v743_v28 = vadd.f32 %v742_v62, %v741_v32 }
 0x16d   :  { %v745_v63 = vadd.f32 %v744_v34, %v743_v28 }
 0x16f   :  { %v747_v48 = vadd.f32 %v746_v35, %v745_v63 }
 0x171   :  { %v749_v27 = vadd.f32 %v748_v26, %v747_v48 }
 0x173   :  { %v751_v16 = vadd.f32 %v750_v41, %v749_v27 }
 0x175   :  { %v753_v40 = vadd.f32 %v752_v30, %v751_v16  ;;  %v798_v16 = vsub.s32 2, %v5454_v38 }
 0x177   :  { %v755_v32 = vadd.f32 %v754_v37, %v753_v40 }
 0x179   :  { %v757_v62 = vadd.f32 %v756_v59, %v755_v32 }
 0x17b   :  { %v759_v15 = vadd.f32 %v758_v58, %v757_v62 }
 0x17d   :  { %v761_v14 = vadd.f32 %v760_v57, %v759_v15 }
 0x17f   :  { %v763_v13 = vadd.f32 %v762_v29, %v761_v14 }
 0x181   :  { %v765_v45 = vadd.f32 %v764_v0, %v763_v13  ;;  %v799_v13 = vrot.slane %v5460_v39, %v798_v16 }
 0x183   :  { %v766_v28 = vrot.slane %v765_v45, 4 }
 0x185   :  { %v767_v34 = vadd.f32 %v766_v28, %v765_v45 }
 0x187   :  { %v768_v12 = vrot.slane %v767_v34, 2 }
 0x189   :  { %v769_v11 = vadd.f32 %v768_v12, %v767_v34 }
 0x18b   :  { %v770_v21 = vrot.slane %v769_v11, 1 }
 0x18d   :  { %v771_v31 = vadd.f32 %v770_v21, %v769_v11 }
 0x18f   :  { %v772_v63 = vmul.f32 0.0078125, %v771_v31 }
 0x191   :  { %v773_v35 = vadd.f32 1e-05, %v772_v63 }
 0x193   :  { %4597 = vrsqrt.f32 %v773_v35 }
 0x19d   :  { %v4598_v44 = vpop.eup %4597 }
 0x19e   :  { %v775_v59 = vmul.f32 %v4598_v44, %v5460_v39 }
 0x1a0   :  { %v779_v14 = vrot.slane %v775_v59, %v778_v36 }
 0x1a2   :  { %v780_v12 = vmul.f32 %v779_v14, %v5524_v25  ;;  %v781_v11 = vmul.f32 %v779_v14, %v5527_v46  ;;  %v782_v15 = vmul.f32 %v779_v14, %v5530_v52  ;;  %v783_v21 = vmul.f32 %v779_v14, %v5533_v61 }
 0x1a3   :  { %v784_v57 = vmul.f32 %v779_v14, %v5536_v60  ;;  %v785_v58 = vmul.f32 %v779_v14, %v5539_v53  ;;  %v786_v30 = vmul.f32 %v779_v14, %v5542_v47  ;;  %v787_v37 = vmul.f32 %v779_v14, %v5545_v49 }
 0x1a4   :  { %v788_v29 = vmul.f32 %v779_v14, %v5547_v43  ;;  %v789_v39 = vmul.f32 %v779_v14, %v5549_v33  ;;  %v790_v25 = vmul.f32 %v779_v14, %v5551_v56  ;;  %v791_v46 = vmul.f32 %v779_v14, %v5553_v55 }
 0x1a5   :  { %v792_v52 = vmul.f32 %v779_v14, %v5555_v42  ;;  %v793_v61 = vmul.f32 %v779_v14, %v5557_v54  ;;  %v794_v60 = vmul.f32 %v779_v14, %v5559_v50  ;;  %v795_v53 = vmul.f32 %v779_v14, %v5561_v51 }
 0x1a6   :  { %v800_v0 = vadd.f32 %v799_v13, %v780_v12  ;;  %v801_v47 = vadd.f32 %v799_v13, %v781_v11  ;;  %v802_v48 = vadd.f32 %v799_v13, %v782_v15  ;;  %v803_v49 = vadd.f32 %v799_v13, %v783_v21 }
 0x1a7   :  { %v804_v26 = vadd.f32 %v799_v13, %v784_v57  ;;  %v805_v43 = vadd.f32 %v799_v13, %v785_v58  ;;  %v806_v27 = vadd.f32 %v799_v13, %v786_v30  ;;  %v807_v33 = vadd.f32 %v799_v13, %v787_v37 }
 0x1a8   :  { %v808_v41 = vadd.f32 %v799_v13, %v788_v29  ;;  %v809_v56 = vadd.f32 %v799_v13, %v789_v39  ;;  %v810_v40 = vadd.f32 %v799_v13, %v790_v25  ;;  %v811_v55 = vadd.f32 %v799_v13, %v791_v46 }
 0x1a9   :  { %v812_v32 = vadd.f32 %v799_v13, %v792_v52  ;;  %v813_v42 = vadd.f32 %v799_v13, %v793_v61  ;;  %v814_v62 = vadd.f32 %v799_v13, %v794_v60  ;;  %v815_v54 = vadd.f32 %v799_v13, %v795_v53 }
 0x1aa   :  { %4605 = dma.done.wait [#allocation4], 16384 }
 0x1ab   :  { %4606 = vsyncadd [#allocation4], 4294950912  ;;  %v4249_v50 = vpack.c.bf16 %v801_v47, %v800_v0  ;;  %v4253_v51 = vpack.c.bf16 %v803_v49, %v802_v48 }
 0x1ac   :  { %4607 = dma.done.wait [#allocation4 + $0x1], 2048 }
 0x1ad   :  { %4608 = vsyncadd [#allocation4 + $0x1], 4294965248  ;;  %v839_v45 = vunpack.c.l.bf16 %v5300_v6  ;;  %4250 = vmatprep.subr.bf16.mxu0 %v4249_v50  ;;  %v4257_v28 = vpack.c.bf16 %v805_v43, %v804_v26  ;;  %v4261_v34 = vpack.c.bf16 %v807_v33, %v806_v27  ;;  %v4265_v31 = vpack.c.bf16 %v809_v56, %v808_v41  ;;  %v6244_v49 = vld [vmem:[#allocation136_spill] sm:$0xff]  ;;  %v6246_v43 = vld [vmem:[#allocation19_spill] sm:$0xff] }
 0x1ae   :  { %4252 = vmatpush3.bf16.msra.mxu0 %v4249_v50  ;;  %v840_v63 = vunpack.c.h.bf16 %v5300_v6  ;;  %v841_v35 = vunpack.c.l.bf16 %v5305_v3  ;;  %v4269_v44 = vpack.c.bf16 %v811_v55, %v810_v40  ;;  %v842_v59 = vunpack.c.h.bf16 %v5305_v3  ;;  %v6248_v33 = vld [vmem:[#allocation21_spill] sm:$0xff]  ;;  %v6250_v3 = vld [vmem:[#allocation23_spill] sm:$0xff]  ;;  %v6253_v56 = vld [vmem:[#allocation66_spill] sm:$0xff] }
 0x1af   :  { %3777 = vmatprep.mubr.msk.f32.mxu0 %vm663_vm2, %v839_v45  ;;  %4254 = vmatprep.subr.bf16.mxu0 %v4253_v51  ;;  %v843_v14 = vunpack.c.l.bf16 %v5310_v2  ;;  %v4273_v13 = vpack.c.bf16 %v813_v42, %v812_v32  ;;  %v844_v12 = vunpack.c.h.bf16 %v5310_v2  ;;  %v845_v11 = vunpack.c.l.bf16 %v5315_v1  ;;  %v6249_v2 = vld [vmem:[#allocation22_spill] sm:$0xff]  ;;  %v6254_v40 = vld [vmem:[#allocation67_spill] sm:$0xff]  ;;  %v6255_v32 = vld [vmem:[#allocation68_spill] sm:$0xff] }
 0x1b0   :  { %v4277_v15 = vpack.c.bf16 %v815_v54, %v814_v62  ;;  %v846_v21 = vunpack.c.h.bf16 %v5315_v1  ;;  %v847_v57 = vunpack.c.l.bf16 %v5320_v7  ;;  %v4281_v58 = vpack.c.bf16 %v4705_v10, %v4700_v9  ;;  %v6251_v1 = vld [vmem:[#allocation64_spill] sm:$0xff]  ;;  %v6256_v42 = vld [vmem:[#allocation69_spill] sm:$0xff]  ;;  %v6257_v54 = vld [vmem:[#allocation70_spill] sm:$0xff] }
 0x1b1   :  { %v848_v30 = vunpack.c.h.bf16 %v5320_v7  ;;  %v849_v37 = vunpack.c.l.bf16 %v5325_v8  ;;  %v850_v9 = vunpack.c.h.bf16 %v5325_v8  ;;  %v851_v10 = vunpack.c.l.bf16 %v5330_v4  ;;  %v6252_v7 = vld [vmem:[#allocation65_spill] sm:$0xff]  ;;  %v6258_v50 = vld [vmem:[#allocation71_spill] sm:$0xff] }
 0x1b2   :  { %4256 = vmatpush3.bf16.msra.mxu0 %v4253_v51  ;;  %v852_v29 = vunpack.c.h.bf16 %v5330_v4  ;;  %v853_v39 = vunpack.c.l.bf16 %v5335_v5  ;;  %v854_v25 = vunpack.c.h.bf16 %v5335_v5  ;;  %v855_v46 = vunpack.c.l.bf16 %v5340_v17 }
 0x1b3   :  { %4258 = vmatprep.subr.bf16.mxu0 %v4257_v28  ;;  %v856_v52 = vunpack.c.h.bf16 %v5340_v17  ;;  %v857_v4 = vunpack.c.l.bf16 %v5345_v18  ;;  %v858_v61 = vunpack.c.h.bf16 %v5345_v18  ;;  %v859_v5 = vunpack.c.l.bf16 %v5350_v19 }
 0x1b4   :  { %v860_v60 = vunpack.c.h.bf16 %v5350_v19  ;;  %v861_v17 = vunpack.c.l.bf16 %v5355_v22  ;;  %v862_v53 = vunpack.c.h.bf16 %v5355_v22  ;;  %v863_v18 = vunpack.c.l.bf16 %v5360_v23 }
 0x1b5   :  { %v864_v0 = vunpack.c.h.bf16 %v5360_v23  ;;  %v865_v19 = vunpack.c.l.bf16 %v5365_v24  ;;  %v866_v47 = vunpack.c.h.bf16 %v5365_v24  ;;  %v867_v22 = vunpack.c.l.bf16 %v5370_v20  ;;  %v6245_v24 = vld [vmem:[#allocation18_spill] sm:$0xff] }
 0x1b6   :  { %4260 = vmatpush3.bf16.msra.mxu0 %v4257_v28  ;;  %v868_v48 = vunpack.c.h.bf16 %v5370_v20  ;;  %v869_v23 = vunpack.c.l.bf16 %v6244_v49  ;;  %v870_v26 = vunpack.c.h.bf16 %v6244_v49  ;;  %v4285_v27 = vpack.c.bf16 %v6246_v43, %v6245_v24  ;;  %v6247_v20 = vld [vmem:[#allocation20_spill] sm:$0xff]  ;;  %v6260_v28 = vld [vmem:[#allocation33_spill] sm:$0xff] }
 0x1b7   :  { %4262 = vmatprep.subr.bf16.mxu0 %v4261_v34  ;;  %v4289_v41 = vpack.c.bf16 %v6248_v33, %v6247_v20  ;;  %v4293_v6 = vpack.c.bf16 %v6250_v3, %v6249_v2  ;;  %v4329_v8 = vpack.c.bf16 %v6252_v7, %v6251_v1  ;;  %v4333_v55 = vpack.c.bf16 %v6254_v40, %v6253_v56  ;;  %v6274_v24 = vld [vmem:[#allocation85_spill] sm:$0xff]  ;;  %v6275_v33 = vld [vmem:[#allocation86_spill] sm:$0xff]  ;;  %v6277_v1 = vld [vmem:[#allocation96_spill] sm:$0xff] }
 0x1b8   :  { %v4337_v62 = vpack.c.bf16 %v6256_v42, %v6255_v32  ;;  %v4341_v51 = vpack.c.bf16 %v6258_v50, %v6257_v54  ;;  %v6278_v7 = vld [vmem:[#allocation97_spill] sm:$0xff]  ;;  %vm3223_vm6 = vcmask 130112   ;;  %vm3234_vm7 = vcmask 1041409  }
 0x1b9   :  { %4330 = vmatprep.subr.bf16.mxu1 %v4329_v8  ;;  %vm3237_vm8 = vcmask 123904   ;;  %vm3255_vm9 = vcmask 1024  }
 0x1ba   :  { %4264 = vmatpush3.bf16.msra.mxu0 %v4261_v34  ;;  %4332 = vmatpush3.bf16.msra.mxu1 %v4329_v8  ;;  %v4361_v8 = vpack.c.bf16 %v6278_v7, %v6277_v1  ;;  %v6289_v7 = vld [vmem:[#allocation102_spill] sm:$0xff] }
 0x1bb   :  { %4266 = vmatprep.subr.bf16.mxu0 %v4265_v31  ;;  %4334 = vmatprep.subr.bf16.mxu1 %v4333_v55 }
 0x1bd   :  { %3778 = vmatmul.mubr.msk.f32.vlgmr.msra.gmra.mrb[16].mxu0 %vm663_vm2, %v840_v63 }
 0x1be   :  { %4268 = vmatpush3.bf16.msra.mxu0 %v4265_v31  ;;  %3780 = vmatprep.mubr.msk.f32.mxu0 %vm663_vm2, %v841_v35  ;;  %v6261_v31 = vld [vmem:[#allocation80_spill] sm:$0xff] }
 0x1bf   :  { %4270 = vmatprep.subr.bf16.mxu0 %v4269_v44  ;;  %4336 = vmatpush3.bf16.msra.mxu1 %v4333_v55 }
 0x1c0   :  { %4338 = vmatprep.subr.bf16.mxu1 %v4337_v62 }
 0x1c1   :  { %3781 = vmatmul.mubr.msk.f32.gmra.mrb[18].mxu0 %vm663_vm2, %v842_v59 }
 0x1c2   :  { %3783 = vmatprep.mubr.msk.f32.mxu0 %vm663_vm2, %v843_v14  ;;  %4272 = vmatpush3.bf16.msra.mxu0 %v4269_v44 }
 0x1c3   :  { %4274 = vmatprep.subr.bf16.mxu0 %v4273_v13  ;;  %4340 = vmatpush3.bf16.msra.mxu1 %v4337_v62 }
 0x1c4   :  { %4342 = vmatprep.subr.bf16.mxu1 %v4341_v51 }
 0x1c5   :  { %3784 = vmatmul.mubr.msk.f32.gmra.mrb[20].mxu0 %vm663_vm2, %v844_v12 }
 0x1c6   :  { %3786 = vmatprep.mubr.msk.f32.mxu0 %vm663_vm2, %v845_v11  ;;  %4276 = vmatpush3.bf16.msra.mxu0 %v4273_v13 }
 0x1c7   :  { %4278 = vmatprep.subr.bf16.mxu0 %v4277_v15  ;;  %4344 = vmatpush3.bf16.msra.mxu1 %v4341_v51 }
 0x1c9   :  { %3787 = vmatmul.mubr.msk.f32.gmra.mrb[22].mxu0 %vm663_vm2, %v846_v21 }
 0x1ca   :  { %3789 = vmatprep.mubr.msk.f32.mxu0 %vm663_vm2, %v847_v57  ;;  %4280 = vmatpush3.bf16.msra.mxu0 %v4277_v15 }
 0x1cb   :  { %4282 = vmatprep.subr.bf16.mxu0 %v4281_v58 }
 0x1cd   :  { %3790 = vmatmul.mubr.msk.f32.gmra.mrb[24].mxu0 %vm663_vm2, %v848_v30 }
 0x1ce   :  { %3792 = vmatprep.mubr.msk.f32.mxu0 %vm663_vm2, %v849_v37 }
 0x1d1   :  { %3793 = vmatmul.mubr.msk.f32.gmra.mrb[26].mxu0 %vm663_vm2, %v850_v9 }
 0x1d2   :  { %3795 = vmatprep.mubr.msk.f32.mxu0 %vm663_vm2, %v851_v10 }
 0x1d5   :  { %3796 = vmatmul.mubr.msk.f32.gmra.mrb[28].mxu0 %vm663_vm2, %v852_v29 }
 0x1d6   :  { %3798 = vmatprep.mubr.msk.f32.mxu0 %vm663_vm2, %v853_v39 }
 0x1d9   :  { %3799 = vmatmul.mubr.msk.f32.gmra.mrb[30].mxu0 %vm663_vm2, %v854_v25 }
 0x1da   :  { %3801 = vmatprep.mubr.msk.f32.mxu0 %vm663_vm2, %v855_v46 }
 0x1dd   :  { %3802 = vmatmul.mubr.msk.f32.gmra.mrb[32].mxu0 %vm663_vm2, %v856_v52 }
 0x1de   :  { %3804 = vmatprep.mubr.msk.f32.mxu0 %vm663_vm2, %v857_v4 }
 0x1e1   :  { %3805 = vmatmul.mubr.msk.f32.gmra.mrb[34].mxu0 %vm663_vm2, %v858_v61 }
 0x1e2   :  { %3807 = vmatprep.mubr.msk.f32.mxu0 %vm663_vm2, %v859_v5 }
 0x1e5   :  { %3808 = vmatmul.mubr.msk.f32.gmra.mrb[36].mxu0 %vm663_vm2, %v860_v60 }
 0x1e6   :  { %3810 = vmatprep.mubr.msk.f32.mxu0 %vm663_vm2, %v861_v17 }
 0x1e9   :  { %3811 = vmatmul.mubr.msk.f32.gmra.mrb[38].mxu0 %vm663_vm2, %v862_v53 }
 0x1ea   :  { %3813 = vmatprep.mubr.msk.f32.mxu0 %vm663_vm2, %v863_v18 }
 0x1ed   :  { %3814 = vmatmul.mubr.msk.f32.gmra.mrb[40].mxu0 %vm663_vm2, %v864_v0 }
 0x1ee   :  { %3816 = vmatprep.mubr.msk.f32.mxu0 %vm663_vm2, %v865_v19 }
 0x1f1   :  { %3817 = vmatmul.mubr.msk.f32.gmra.mrb[42].mxu0 %vm663_vm2, %v866_v47 }
 0x1f2   :  { %3819 = vmatprep.mubr.msk.f32.mxu0 %vm663_vm2, %v867_v22 }
 0x1f5   :  { %3820 = vmatmul.mubr.msk.f32.gmra.mrb[44].mxu0 %vm663_vm2, %v868_v48 }
 0x1f6   :  { %3822 = vmatprep.mubr.msk.f32.mxu0 %vm663_vm2, %v869_v23 }
 0x1f9   :  { %3823 = vmatmul.mubr.msk.f32.gmra.mrb[46].mxu0 %vm663_vm2, %v870_v26 }
 0x1fa   :  { %3841 = vmatprep.mubr.msk.f32.mxu0 %vm663_vm2, %v839_v45  ;;  %v6259_v45 = vld [vmem:[#allocation32_spill] sm:$0xff] }
 0x1fb   :  { %v4297_v34 = vpack.c.bf16 %v6260_v28, %v6259_v45 }
 0x1fd   :  { %3842 = vmatmul.mubr.msk.f32.vlgmr.msra.gmra.mrb[48].mxu0 %vm663_vm2, %v840_v63  ;;  %v6262_v63 = vld [vmem:[#allocation81_spill] sm:$0xff] }
 0x1fe   :  { %3844 = vmatprep.mubr.msk.f32.mxu0 %vm663_vm2, %v841_v35  ;;  %4284 = vmatpush3.bf16.msra.mxu0 %v4281_v58  ;;  %v4345_v35 = vpack.c.bf16 %v6262_v63, %v6261_v31  ;;  %v6265_v58 = vld [vmem:[#allocation36_spill] sm:$0xff] }
 0x1ff   :  { %4286 = vmatprep.subr.bf16.mxu0 %v4285_v27 }
 0x200   :  { %4346 = vmatprep.subr.bf16.mxu1 %v4345_v35 }
 0x201   :  { %3845 = vmatmul.mubr.msk.f32.gmra.mrb[50].mxu0 %vm663_vm2, %v842_v59 }
 0x202   :  { %3847 = vmatprep.mubr.msk.f32.mxu0 %vm663_vm2, %v843_v14  ;;  %4288 = vmatpush3.bf16.msra.mxu0 %v4285_v27 }
 0x203   :  { %4290 = vmatprep.subr.bf16.mxu0 %v4289_v41 }
 0x205   :  { %3848 = vmatmul.mubr.msk.f32.gmra.mrb[52].mxu0 %vm663_vm2, %v844_v12  ;;  %v6263_v12 = vld [vmem:[#allocation34_spill] sm:$0xff] }
 0x206   :  { %3850 = vmatprep.mubr.msk.f32.mxu0 %vm663_vm2, %v845_v11  ;;  %4292 = vmatpush3.bf16.msra.mxu0 %v4289_v41  ;;  %v6264_v11 = vld [vmem:[#allocation35_spill] sm:$0xff] }
 0x207   :  { %4294 = vmatprep.subr.bf16.mxu0 %v4293_v6  ;;  %v4301_v15 = vpack.c.bf16 %v6264_v11, %v6263_v12  ;;  %v6276_v41 = vld [vmem:[#allocation87_spill] sm:$0xff] }
 0x208   :  { %v4357_v2 = vpack.c.bf16 %v6276_v41, %v6275_v33  ;;  %v6280_v12 = vld [vmem:[#allocation51_spill] sm:$0xff]  ;;  %v6287_v41 = vld [vmem:[#allocation100_spill] sm:$0xff] }
 0x209   :  { %3851 = vmatmul.mubr.msk.f32.gmra.mrb[54].mxu0 %vm663_vm2, %v846_v21 }
 0x20a   :  { %3853 = vmatprep.mubr.msk.f32.mxu0 %vm663_vm2, %v847_v57  ;;  %4296 = vmatpush3.bf16.msra.mxu0 %v4293_v6 }
 0x20b   :  { %4298 = vmatprep.subr.bf16.mxu0 %v4297_v34 }
 0x20d   :  { %3854 = vmatmul.mubr.msk.f32.gmra.mrb[56].mxu0 %vm663_vm2, %v848_v30  ;;  %v6266_v30 = vld [vmem:[#allocation37_spill] sm:$0xff] }
 0x20e   :  { %3856 = vmatprep.mubr.msk.f32.mxu0 %vm663_vm2, %v849_v37  ;;  %v4305_v37 = vpack.c.bf16 %v6266_v30, %v6265_v58  ;;  %v6281_v30 = vld [vmem:[#allocation52_spill] sm:$0xff] }
 0x211   :  { %3857 = vmatmul.mubr.msk.f32.gmra.mrb[58].mxu0 %vm663_vm2, %v850_v9 }
 0x212   :  { %3859 = vmatprep.mubr.msk.f32.mxu0 %vm663_vm2, %v851_v10 }
 0x215   :  { %3860 = vmatmul.mubr.msk.f32.gmra.mrb[60].mxu0 %vm663_vm2, %v852_v29  ;;  %v6267_v29 = vld [vmem:[#allocation38_spill] sm:$0xff] }
 0x216   :  { %3862 = vmatprep.mubr.msk.f32.mxu0 %vm663_vm2, %v853_v39  ;;  %v6268_v39 = vld [vmem:[#allocation39_spill] sm:$0xff] }
 0x219   :  { %3863 = vmatmul.mubr.msk.f32.gmra.mrb[62].mxu0 %vm663_vm2, %v854_v25  ;;  %v4309_v25 = vpack.c.bf16 %v6268_v39, %v6267_v29 }
 0x21a   :  { %3865 = vmatprep.mubr.msk.f32.mxu0 %vm663_vm2, %v855_v46 }
 0x21d   :  { %3866 = vmatmul.mubr.msk.f32.gmra.mrb[64].mxu0 %vm663_vm2, %v856_v52 }
 0x21e   :  { %3868 = vmatprep.mubr.msk.f32.mxu0 %vm663_vm2, %v857_v4  ;;  %v6269_v4 = vld [vmem:[#allocation48_spill] sm:$0xff] }
 0x221   :  { %3869 = vmatmul.mubr.msk.f32.gmra.mrb[66].mxu0 %vm663_vm2, %v858_v61  ;;  %v6270_v61 = vld [vmem:[#allocation49_spill] sm:$0xff] }
 0x222   :  { %3871 = vmatprep.mubr.msk.f32.mxu0 %vm663_vm2, %v859_v5  ;;  %v4313_v5 = vpack.c.bf16 %v6270_v61, %v6269_v4 }
 0x225   :  { %3872 = vmatmul.mubr.msk.f32.gmra.mrb[68].mxu0 %vm663_vm2, %v860_v60 }
 0x226   :  { %3874 = vmatprep.mubr.msk.f32.mxu0 %vm663_vm2, %v861_v17 }
 0x229   :  { %3875 = vmatmul.mubr.msk.f32.gmra.mrb[70].mxu0 %vm663_vm2, %v862_v53 }
 0x22a   :  { %3877 = vmatprep.mubr.msk.f32.mxu0 %vm663_vm2, %v863_v18 }
 0x22d   :  { %3878 = vmatmul.mubr.msk.f32.gmra.mrb[72].mxu0 %vm663_vm2, %v864_v0 }
 0x22e   :  { %3880 = vmatprep.mubr.msk.f32.mxu0 %vm663_vm2, %v865_v19 }
 0x231   :  { %3881 = vmatmul.mubr.msk.f32.gmra.mrb[74].mxu0 %vm663_vm2, %v866_v47  ;;  %v6271_v47 = vld [vmem:[#allocation82_spill] sm:$0xff] }
 0x232   :  { %3883 = vmatprep.mubr.msk.f32.mxu0 %vm663_vm2, %v867_v22  ;;  %v6272_v22 = vld [vmem:[#allocation83_spill] sm:$0xff] }
 0x235   :  { %3884 = vmatmul.mubr.msk.f32.gmra.mrb[76].mxu0 %vm663_vm2, %v868_v48  ;;  %v4349_v48 = vpack.c.bf16 %v6272_v22, %v6271_v47 }
 0x236   :  { %3886 = vmatprep.mubr.msk.f32.mxu0 %vm663_vm2, %v869_v23 }
 0x239   :  { %3887 = vmatmul.mubr.msk.f32.gmra.mrb[78].mxu0 %vm663_vm2, %v870_v26  ;;  %v6273_v26 = vld [vmem:[#allocation84_spill] sm:$0xff] }
 0x23a   :  { %v4353_v43 = vpack.c.bf16 %v6274_v24, %v6273_v26  ;;  %v6285_v26 = vld [vmem:[#allocation98_spill] sm:$0xff]  ;;  %v6286_v24 = vld [vmem:[#allocation99_spill] sm:$0xff] }
 0x290   :  { %v5795_v44 = vpop.f32.mrb[16].mxu0 }
 0x291   :  { %v5797_v59 = vpop.f32.mrb[17].mxu0 }
 0x294   :  { %v3782_v14 = vpop.f32.mrb[18].mxu0 }
 0x295   :  { %v1043_v13 = vpop.f32.mrb[19].mxu0 }
 0x296   :  { %3905 = vmatprep.mubr.msk.f32.mxu0 %vm663_vm2, %v1043_v13  ;;  %v6279_v13 = vld [vmem:[#allocation50_spill] sm:$0xff] }
 0x297   :  { %3906 = vmatmul.mubr.msk.f32.vlgmr.msra.gmra.mrb[80].mxu0 %vm663_vm2, %v3782_v14  ;;  %v4317_v11 = vpack.c.bf16 %v6280_v12, %v6279_v13  ;;  %v6291_v13 = vld [vmem:[#allocation112_spill] sm:$0xff]  ;;  %v6292_v12 = vld [vmem:[#allocation113_spill] sm:$0xff] }
 0x298   :  { %v5803_v21 = vpop.f32.mrb[20].mxu0  ;;  %4300 = vmatpush3.bf16.msra.mxu0 %v4297_v34 }
 0x299   :  { %v5805_v57 = vpop.f32.mrb[21].mxu0  ;;  %4302 = vmatprep.subr.bf16.mxu0 %v4301_v15 }
 0x29c   :  { %v3788_v9 = vpop.f32.mrb[22].mxu0  ;;  %4304 = vmatpush3.bf16.msra.mxu0 %v4301_v15 }
 0x29d   :  { %v1063_v10 = vpop.f32.mrb[23].mxu0  ;;  %4306 = vmatprep.subr.bf16.mxu0 %v4305_v37 }
 0x2a0   :  { %v5811_v46 = vpop.f32.mrb[24].mxu0  ;;  %4308 = vmatpush3.bf16.msra.mxu0 %v4305_v37  ;;  %v6282_v37 = vld [vmem:[#allocation53_spill] sm:$0xff] }
 0x2a1   :  { %v5813_v52 = vpop.f32.mrb[25].mxu0  ;;  %4310 = vmatprep.subr.bf16.mxu0 %v4309_v25  ;;  %v4321_v29 = vpack.c.bf16 %v6282_v37, %v6281_v30  ;;  %v6294_v30 = vld [vmem:[#allocation115_spill] sm:$0xff] }
 0x2a4   :  { %v5817_v60 = vpop.f32.mrb[26].mxu0  ;;  %4312 = vmatpush3.bf16.msra.mxu0 %v4309_v25  ;;  %v6284_v25 = vld [vmem:[#allocation55_spill] sm:$0xff] }
 0x2a5   :  { %v1083_v17 = vpop.f32.mrb[27].mxu0  ;;  %4314 = vmatprep.subr.bf16.mxu0 %v4313_v5 }
 0x2a8   :  { %v5819_v53 = vpop.f32.mrb[28].mxu0 }
 0x2a9   :  { %v5821_v18 = vpop.f32.mrb[29].mxu0 }
 0x2ac   :  { %v3800_v0 = vpop.f32.mrb[30].mxu0 }
 0x2ad   :  { %v1103_v19 = vpop.f32.mrb[31].mxu0 }
 0x2ae   :  { %3971 = vmatprep.mubr.msk.f32.mxu1 %vm663_vm2, %v1103_v19 }
 0x2af   :  { %3972 = vmatmul.mubr.msk.f32.vlgmr.msra.gmra.mrb[0].mxu1 %vm663_vm2, %v3800_v0 }
 0x2b0   :  { %v5827_v49 = vpop.f32.mrb[32].mxu0  ;;  %4348 = vmatpush3.bf16.msra.mxu1 %v4345_v35 }
 0x2b1   :  { %v5829_v23 = vpop.f32.mrb[33].mxu0  ;;  %4350 = vmatprep.subr.bf16.mxu1 %v4349_v48 }
 0x2b4   :  { %v5833_v27 = vpop.f32.mrb[34].mxu0  ;;  %4352 = vmatpush3.bf16.msra.mxu1 %v4349_v48 }
 0x2b5   :  { %v1123_v20 = vpop.f32.mrb[35].mxu0  ;;  %4354 = vmatprep.subr.bf16.mxu1 %v4353_v43 }
 0x2b8   :  { %v5837_v3 = vpop.f32.mrb[36].mxu0  ;;  %4356 = vmatpush3.bf16.msra.mxu1 %v4353_v43  ;;  %v4365_v43 = vpack.c.bf16 %v6286_v24, %v6285_v26 }
 0x2b9   :  { %v5839_v6 = vpop.f32.mrb[37].mxu0  ;;  %4358 = vmatprep.subr.bf16.mxu1 %v4357_v2 }
 0x2bc   :  { %v5843_v56 = vpop.f32.mrb[38].mxu0  ;;  %4360 = vmatpush3.bf16.msra.mxu1 %v4357_v2  ;;  %v6288_v2 = vld [vmem:[#allocation101_spill] sm:$0xff] }
 0x2bd   :  { %v1143_v40 = vpop.f32.mrb[39].mxu0  ;;  %4362 = vmatprep.subr.bf16.mxu1 %v4361_v8  ;;  %v4369_v1 = vpack.c.bf16 %v6288_v2, %v6287_v41 }
 0x2c0   :  { %v5845_v55 = vpop.f32.mrb[40].mxu0 }
 0x2c1   :  { %v5847_v32 = vpop.f32.mrb[41].mxu0 }
 0x2c4   :  { %v5849_v42 = vpop.f32.mrb[42].mxu0 }
 0x2c5   :  { %v5851_v62 = vpop.f32.mrb[43].mxu0 }
 0x2c8   :  { %v5853_v54 = vpop.f32.mrb[44].mxu0 }
 0x2c9   :  { %v5855_v50 = vpop.f32.mrb[45].mxu0 }
 0x2cc   :  { %v5857_v51 = vpop.f32.mrb[46].mxu0 }
 0x2cd   :  { %v5859_v45 = vpop.f32.mrb[47].mxu0 }
 0x2d0   :  { %v5861_v28 = vpop.f32.mrb[48].mxu0 }
 0x2d1   :  { %v5863_v34 = vpop.f32.mrb[49].mxu0 }
 0x2d4   :  { %v3846_v31 = vpop.f32.mrb[50].mxu0 }
 0x2d5   :  { %v1268_v63 = vpop.f32.mrb[51].mxu0 }
 0x2d6   :  { %3908 = vmatprep.mubr.msk.f32.mxu0 %vm663_vm2, %v1268_v63 }
 0x2d7   :  { %3909 = vmatmul.mubr.msk.f32.gmra.mrb[82].mxu0 %vm663_vm2, %v3846_v31  ;;  %v6290_v31 = vld [vmem:[#allocation103_spill] sm:$0xff] }
 0x2d8   :  { %v5867_v35 = vpop.f32.mrb[52].mxu0  ;;  %3927 = vmatprep.mubr.msk.f32.mxu0 %vm663_vm2, %v1063_v10 }
 0x2d9   :  { %v5870_v14 = vpop.f32.mrb[53].mxu0 }
 0x2db   :  { %3928 = vmatmul.mubr.msk.f32.vlgmr.msra.gmra.mrb[80].mxu0 %vm663_vm2, %v3788_v9  ;;  %v6283_v9 = vld [vmem:[#allocation54_spill] sm:$0xff] }
 0x2dc   :  { %4316 = vmatpush3.bf16.msra.mxu0 %v4313_v5  ;;  %v3852_v15 = vpop.f32.mrb[54].mxu0  ;;  %v4325_v4 = vpack.c.bf16 %v6284_v25, %v6283_v9  ;;  %v6295_v25 = vld [vmem:[#allocation116_spill] sm:$0xff] }
 0x2dd   :  { %v1288_v58 = vpop.f32.mrb[55].mxu0  ;;  %4318 = vmatprep.subr.bf16.mxu0 %v4317_v11 }
 0x2de   :  { %3930 = vmatprep.mubr.msk.f32.mxu0 %vm663_vm2, %v1288_v58 }
 0x2df   :  { %3931 = vmatmul.mubr.msk.f32.gmra.mrb[82].mxu0 %vm663_vm2, %v3852_v15 }
 0x2e0   :  { %4320 = vmatpush3.bf16.msra.mxu0 %v4317_v11  ;;  %v5879_v10 = vpop.f32.mrb[56].mxu0  ;;  %3949 = vmatprep.mubr.msk.f32.mxu0 %vm663_vm2, %v1083_v17  ;;  %v4377_v11 = vpack.c.bf16 %v6292_v12, %v6291_v13  ;;  %v6305_v13 = vld [vmem:[#allocation134_spill] sm:$0xff]  ;;  %v6306_v12 = vld [vmem:[#allocation135_spill] sm:$0xff] }
 0x2e1   :  { %v5882_v39 = vpop.f32.mrb[57].mxu0  ;;  %4322 = vmatprep.subr.bf16.mxu0 %v4321_v29 }
 0x2e4   :  { %4324 = vmatpush3.bf16.msra.mxu0 %v4321_v29  ;;  %v3858_v61 = vpop.f32.mrb[58].mxu0 }
 0x2e5   :  { %v1308_v5 = vpop.f32.mrb[59].mxu0  ;;  %4326 = vmatprep.subr.bf16.mxu0 %v4325_v4 }
 0x2e8   :  { %4328 = vmatpush3.bf16.msra.mxu0 %v4325_v4  ;;  %v5886_v0 = vpop.f32.mrb[60].mxu0  ;;  %v6296_v4 = vld [vmem:[#allocation117_spill] sm:$0xff] }
 0x2e9   :  { %v5888_v19 = vpop.f32.mrb[61].mxu0 }
 0x2eb   :  { %3950 = vmatmul.mubr.msk.f32.vlgmr.msra.gmra.mrb[80].mxu0 %vm663_vm2, %v5817_v60 }
 0x2ec   :  { %3952 = vmatprep.mubr.msk.f32.mxu0 %vm663_vm2, %v1308_v5  ;;  %v3864_v17 = vpop.f32.mrb[62].mxu0 }
 0x2ed   :  { %v1328_v47 = vpop.f32.mrb[63].mxu0 }
 0x2ee   :  { %3974 = vmatprep.mubr.msk.f32.mxu1 %vm663_vm2, %v1328_v47  ;;  %v6297_v47 = vld [vmem:[#allocation118_spill] sm:$0xff] }
 0x2ef   :  { %3953 = vmatmul.mubr.msk.f32.gmra.mrb[82].mxu0 %vm663_vm2, %v3858_v61  ;;  %3975 = vmatmul.mubr.msk.f32.gmra.mrb[2].mxu1 %vm663_vm2, %v3864_v17  ;;  %v4385_v61 = vpack.c.bf16 %v6296_v4, %v6295_v25 }
 0x2f0   :  { %3993 = vmatprep.mubr.msk.f32.mxu1 %vm663_vm2, %v1123_v20  ;;  %v5897_v22 = vpop.f32.mrb[64].mxu0 }
 0x2f1   :  { %v5899_v48 = vpop.f32.mrb[65].mxu0 }
 0x2f3   :  { %3994 = vmatmul.mubr.msk.f32.vlgmr.msra.gmra.mrb[0].mxu1 %vm663_vm2, %v5833_v27  ;;  %v4373_v27 = vpack.c.bf16 %v6290_v31, %v6289_v7  ;;  %v6302_v7 = vld [vmem:[#allocation131_spill] sm:$0xff]  ;;  %v6303_v31 = vld [vmem:[#allocation132_spill] sm:$0xff] }
 0x2f4   :  { %4364 = vmatpush3.bf16.msra.mxu1 %v4361_v8  ;;  %v3870_v60 = vpop.f32.mrb[66].mxu0 }
 0x2f5   :  { %v1348_v33 = vpop.f32.mrb[67].mxu0  ;;  %4366 = vmatprep.subr.bf16.mxu1 %v4365_v43 }
 0x2f6   :  { %3996 = vmatprep.mubr.msk.f32.mxu1 %vm663_vm2, %v1348_v33  ;;  %v6300_v33 = vld [vmem:[#allocation129_spill] sm:$0xff] }
 0x2f7   :  { %3997 = vmatmul.mubr.msk.f32.gmra.mrb[2].mxu1 %vm663_vm2, %v3870_v60  ;;  %v6299_v60 = vld [vmem:[#allocation128_spill] sm:$0xff] }
 0x2f8   :  { %4368 = vmatpush3.bf16.msra.mxu1 %v4365_v43  ;;  %4015 = vmatprep.mubr.msk.f32.mxu1 %vm663_vm2, %v1143_v40  ;;  %v5910_v20 = vpop.f32.mrb[68].mxu0  ;;  %v6293_v40 = vld [vmem:[#allocation114_spill] sm:$0xff]  ;;  %v4393_v41 = vpack.c.bf16 %v6300_v33, %v6299_v60  ;;  %v6318_v33 = vld [vmem:[#allocation27_spill] sm:$0xff] }
 0x2f9   :  { %4370 = vmatprep.subr.bf16.mxu1 %v4369_v1  ;;  %v5914_v8 = vpop.f32.mrb[69].mxu0  ;;  %v4381_v37 = vpack.c.bf16 %v6294_v30, %v6293_v40  ;;  %v6309_v30 = vld [vmem:[#allocation12_spill] sm:$0xff]  ;;  %v6317_v60 = vld [vmem:[#allocation26_spill] sm:$0xff] }
 0x2fc   :  { %4372 = vmatpush3.bf16.msra.mxu1 %v4369_v1  ;;  %v3876_v63 = vpop.f32.mrb[70].mxu0  ;;  %v6301_v1 = vld [vmem:[#allocation130_spill] sm:$0xff] }
 0x2fd   :  { %4374 = vmatprep.subr.bf16.mxu1 %v4373_v27  ;;  %v1368_v15 = vpop.f32.mrb[71].mxu0 }
 0x300   :  { %4376 = vmatpush3.bf16.msra.mxu1 %v4373_v27  ;;  %v5918_v58 = vpop.f32.mrb[72].mxu0  ;;  %v6304_v27 = vld [vmem:[#allocation133_spill] sm:$0xff] }
 0x301   :  { %4378 = vmatprep.subr.bf16.mxu1 %v4377_v11  ;;  %v5922_v29 = vpop.f32.mrb[73].mxu0 }
 0x303   :  { %4016 = vmatmul.mubr.msk.f32.vlgmr.msra.gmra.mrb[0].mxu1 %vm663_vm2, %v5843_v56  ;;  %v6298_v56 = vld [vmem:[#allocation119_spill] sm:$0xff] }
 0x304   :  { %4380 = vmatpush3.bf16.msra.mxu1 %v4377_v11  ;;  %4018 = vmatprep.mubr.msk.f32.mxu1 %vm663_vm2, %v1368_v15  ;;  %v3882_v9 = vpop.f32.mrb[74].mxu0  ;;  %v4389_v26 = vpack.c.bf16 %v6298_v56, %v6297_v47  ;;  %v4405_v11 = vpack.c.bf16 %v6306_v12, %v6305_v13  ;;  %v6308_v15 = vld [vmem:[#allocation11_spill] sm:$0xff]  ;;  %v6316_v56 = vld [vmem:[#allocation25_spill] sm:$0xff] }
 0x305   :  { %4382 = vmatprep.subr.bf16.mxu1 %v4381_v37  ;;  %v1388_v5 = vpop.f32.mrb[75].mxu0 }
 0x307   :  { %4019 = vmatmul.mubr.msk.f32.gmra.mrb[2].mxu1 %vm663_vm2, %v3876_v63  ;;  %v4401_v63 = vpack.c.bf16 %v6304_v27, %v6303_v31  ;;  %v6325_v27 = vld [vmem:[#allocation42_spill] sm:$0xff] }
 0x308   :  { %4384 = vmatpush3.bf16.msra.mxu1 %v4381_v37  ;;  %4037 = vmatprep.mubr.msk.f32.mxu1 %vm663_vm2, %v5851_v62  ;;  %v5932_v17 = vpop.f32.mrb[76].mxu0  ;;  %v4397_v62 = vpack.c.bf16 %v6302_v7, %v6301_v1  ;;  %v6310_v37 = vld [vmem:[#allocation13_spill] sm:$0xff]  ;;  %v6321_v1 = vld [vmem:[#allocation30_spill] sm:$0xff]  ;;  %v6322_v7 = vld [vmem:[#allocation31_spill] sm:$0xff] }
 0x309   :  { %4386 = vmatprep.subr.bf16.mxu1 %v4385_v61  ;;  %v5936_v24 = vpop.f32.mrb[77].mxu0  ;;  %v4413_v25 = vpack.c.bf16 %v6310_v37, %v6309_v30  ;;  %v6333_v30 = vld [vmem:[#allocation58_spill] sm:$0xff]  ;;  %v6334_v37 = vld [vmem:[#allocation59_spill] sm:$0xff] }
 0x30c   :  { %4388 = vmatpush3.bf16.msra.mxu1 %v4385_v61  ;;  %v3888_v43 = vpop.f32.mrb[78].mxu0  ;;  %v6313_v61 = vld [vmem:[#allocation16_spill] sm:$0xff] }
 0x30d   :  { %4390 = vmatprep.subr.bf16.mxu1 %v4389_v26  ;;  %v1408_v2 = vpop.f32.mrb[79].mxu0 }
 0x310   :  { %4392 = vmatpush3.bf16.msra.mxu1 %v4389_v26 }
 0x311   :  { %4394 = vmatprep.subr.bf16.mxu1 %v4393_v41 }
 0x313   :  { %4038 = vmatmul.mubr.msk.f32.vlgmr.msra.gmra.mrb[0].mxu1 %vm663_vm2, %v5849_v42  ;;  %v6307_v42 = vld [vmem:[#allocation10_spill] sm:$0xff] }
 0x314   :  { %4396 = vmatpush3.bf16.msra.mxu1 %v4393_v41  ;;  %4040 = vmatprep.mubr.msk.f32.mxu1 %vm663_vm2, %v1388_v5  ;;  %v4409_v40 = vpack.c.bf16 %v6308_v15, %v6307_v42  ;;  %v6314_v5 = vld [vmem:[#allocation17_spill] sm:$0xff]  ;;  %v4429_v41 = vpack.c.bf16 %v6318_v33, %v6317_v60  ;;  %v6330_v42 = vld [vmem:[#allocation47_spill] sm:$0xff]  ;;  %v6345_v60 = vld [vmem:[#allocation78_spill] sm:$0xff] }
 0x315   :  { %4398 = vmatprep.subr.bf16.mxu1 %v4397_v62  ;;  %v4421_v47 = vpack.c.bf16 %v6314_v5, %v6313_v61  ;;  %v6346_v33 = vld [vmem:[#allocation79_spill] sm:$0xff] }
 0x317   :  { %4041 = vmatmul.mubr.msk.f32.gmra.mrb[2].mxu1 %vm663_vm2, %v3882_v9  ;;  %v6312_v9 = vld [vmem:[#allocation15_spill] sm:$0xff] }
 0x318   :  { %4400 = vmatpush3.bf16.msra.mxu1 %v4397_v62  ;;  %4059 = vmatprep.mubr.msk.f32.mxu1 %vm663_vm2, %v5859_v45  ;;  %v6311_v45 = vld [vmem:[#allocation14_spill] sm:$0xff]  ;;  %v4437_v62 = vpack.c.bf16 %v6322_v7, %v6321_v1 }
 0x319   :  { %4402 = vmatprep.subr.bf16.mxu1 %v4401_v63  ;;  %v4417_v4 = vpack.c.bf16 %v6312_v9, %v6311_v45  ;;  %v6337_v9 = vld [vmem:[#allocation62_spill] sm:$0xff] }
 0x31c   :  { %4404 = vmatpush3.bf16.msra.mxu1 %v4401_v63  ;;  %v6326_v63 = vld [vmem:[#allocation43_spill] sm:$0xff] }
 0x31d   :  { %4406 = vmatprep.subr.bf16.mxu1 %v4405_v11  ;;  %v4445_v13 = vpack.c.bf16 %v6326_v63, %v6325_v27  ;;  %v6357_v27 = vld [vmem:[#allocation106_spill] sm:$0xff]  ;;  %v6358_v63 = vld [vmem:[#allocation107_spill] sm:$0xff] }
 0x320   :  { %4408 = vmatpush3.bf16.msra.mxu1 %v4405_v11  ;;  %v6329_v11 = vld [vmem:[#allocation46_spill] sm:$0xff] }
 0x321   :  { %4410 = vmatprep.subr.bf16.mxu1 %v4409_v40  ;;  %v4453_v15 = vpack.c.bf16 %v6330_v42, %v6329_v11 }
 0x323   :  { %4060 = vmatmul.mubr.msk.f32.vlgmr.msra.gmra.mrb[0].mxu1 %vm663_vm2, %v5857_v51  ;;  %v6315_v51 = vld [vmem:[#allocation24_spill] sm:$0xff] }
 0x324   :  { %4412 = vmatpush3.bf16.msra.mxu1 %v4409_v40  ;;  %4062 = vmatprep.mubr.msk.f32.mxu1 %vm663_vm2, %v1408_v2  ;;  %v4425_v26 = vpack.c.bf16 %v6316_v56, %v6315_v51  ;;  %v6342_v51 = vld [vmem:[#allocation75_spill] sm:$0xff] }
 0x325   :  { %4414 = vmatprep.subr.bf16.mxu1 %v4413_v25 }
 0x327   :  { %4063 = vmatmul.mubr.msk.f32.gmra.mrb[2].mxu1 %vm663_vm2, %v3888_v43  ;;  %v6320_v43 = vld [vmem:[#allocation29_spill] sm:$0xff] }
 0x328   :  { %4416 = vmatpush3.bf16.msra.mxu1 %v4413_v25  ;;  %4081 = vmatprep.mubr.msk.f32.mxu1 %vm663_vm2, %v5797_v59  ;;  %v6319_v59 = vld [vmem:[#allocation28_spill] sm:$0xff]  ;;  %v4461_v25 = vpack.c.bf16 %v6334_v37, %v6333_v30  ;;  %v6369_v30 = vld [vmem:[#allocation126_spill] sm:$0xff]  ;;  %v6370_v37 = vld [vmem:[#allocation127_spill] sm:$0xff] }
 0x329   :  { %4418 = vmatprep.subr.bf16.mxu1 %v4417_v4  ;;  %v4433_v2 = vpack.c.bf16 %v6320_v43, %v6319_v59  ;;  %v6349_v43 = vld [vmem:[#allocation90_spill] sm:$0xff] }
 0x32c   :  { %4420 = vmatpush3.bf16.msra.mxu1 %v4417_v4  ;;  %v6338_v4 = vld [vmem:[#allocation63_spill] sm:$0xff] }
 0x32d   :  { %4422 = vmatprep.subr.bf16.mxu1 %v4421_v47  ;;  %v4469_v61 = vpack.c.bf16 %v6338_v4, %v6337_v9 }
 0x330   :  { %4424 = vmatpush3.bf16.msra.mxu1 %v4421_v47  ;;  %v6341_v47 = vld [vmem:[#allocation74_spill] sm:$0xff] }
 0x331   :  { %4426 = vmatprep.subr.bf16.mxu1 %v4425_v26  ;;  %v4477_v56 = vpack.c.bf16 %v6342_v51, %v6341_v47 }
 0x333   :  { %4082 = vmatmul.mubr.msk.f32.vlgmr.msra.gmra.mrb[0].mxu1 %vm663_vm2, %v5795_v44  ;;  %v6323_v44 = vld [vmem:[#allocation40_spill] sm:$0xff] }
 0x334   :  { %4084 = vmatprep.mubr.msk.f32.mxu1 %vm663_vm2, %v5863_v34  ;;  %4428 = vmatpush3.bf16.msra.mxu1 %v4425_v26  ;;  %v6324_v34 = vld [vmem:[#allocation41_spill] sm:$0xff] }
 0x335   :  { %4430 = vmatprep.subr.bf16.mxu1 %v4429_v41  ;;  %v4441_v31 = vpack.c.bf16 %v6324_v34, %v6323_v44  ;;  %v6354_v44 = vld [vmem:[#allocation95_spill] sm:$0xff] }
 0x337   :  { %4085 = vmatmul.mubr.msk.f32.gmra.mrb[2].mxu1 %vm663_vm2, %v5861_v28  ;;  %v6328_v28 = vld [vmem:[#allocation45_spill] sm:$0xff] }
 0x338   :  { %4432 = vmatpush3.bf16.msra.mxu1 %v4429_v41  ;;  %4103 = vmatprep.mubr.msk.f32.mxu1 %vm663_vm2, %v5805_v57  ;;  %v6327_v57 = vld [vmem:[#allocation44_spill] sm:$0xff]  ;;  %v4485_v41 = vpack.c.bf16 %v6346_v33, %v6345_v60 }
 0x339   :  { %4434 = vmatprep.subr.bf16.mxu1 %v4433_v2  ;;  %v4449_v12 = vpack.c.bf16 %v6328_v28, %v6327_v57  ;;  %v6361_v28 = vld [vmem:[#allocation110_spill] sm:$0xff] }
 0x33c   :  { %4436 = vmatpush3.bf16.msra.mxu1 %v4433_v2  ;;  %v6350_v2 = vld [vmem:[#allocation91_spill] sm:$0xff] }
 0x33d   :  { %4438 = vmatprep.subr.bf16.mxu1 %v4437_v62  ;;  %v4493_v1 = vpack.c.bf16 %v6350_v2, %v6349_v43 }
 0x340   :  { %4440 = vmatpush3.bf16.msra.mxu1 %v4437_v62  ;;  %v6353_v62 = vld [vmem:[#allocation94_spill] sm:$0xff] }
 0x341   :  { %4442 = vmatprep.subr.bf16.mxu1 %v4441_v31  ;;  %v4501_v34 = vpack.c.bf16 %v6354_v44, %v6353_v62 }
 0x343   :  { %4104 = vmatmul.mubr.msk.f32.vlgmr.msra.gmra.mrb[0].mxu1 %vm663_vm2, %v5803_v21  ;;  %v6331_v21 = vld [vmem:[#allocation56_spill] sm:$0xff] }
 0x344   :  { %4106 = vmatprep.mubr.msk.f32.mxu1 %vm663_vm2, %v5870_v14  ;;  %4444 = vmatpush3.bf16.msra.mxu1 %v4441_v31  ;;  %v6332_v14 = vld [vmem:[#allocation57_spill] sm:$0xff] }
 0x345   :  { %4446 = vmatprep.subr.bf16.mxu1 %v4445_v13  ;;  %v4457_v40 = vpack.c.bf16 %v6332_v14, %v6331_v21  ;;  %v6366_v21 = vld [vmem:[#allocation123_spill] sm:$0xff] }
 0x347   :  { %4107 = vmatmul.mubr.msk.f32.gmra.mrb[2].mxu1 %vm663_vm2, %v5867_v35  ;;  %v6336_v35 = vld [vmem:[#allocation61_spill] sm:$0xff] }
 0x348   :  { %4448 = vmatpush3.bf16.msra.mxu1 %v4445_v13  ;;  %4125 = vmatprep.mubr.msk.f32.mxu1 %vm663_vm2, %v5813_v52  ;;  %v6335_v52 = vld [vmem:[#allocation60_spill] sm:$0xff]  ;;  %v4509_v13 = vpack.c.bf16 %v6358_v63, %v6357_v27 }
 0x349   :  { %4450 = vmatprep.subr.bf16.mxu1 %v4449_v12  ;;  %v4465_v45 = vpack.c.bf16 %v6336_v35, %v6335_v52  ;;  %v3125_v52 = vld [vmem:[%s6109_s4] sm:$0x7]  ;;  %v6371_v35 = vsub.s32 0, %v5454_v38 }
 0x34c   :  { %4452 = vmatpush3.bf16.msra.mxu1 %v4449_v12  ;;  %v6362_v12 = vld [vmem:[#allocation111_spill] sm:$0xff] }
 0x34d   :  { %4454 = vmatprep.subr.bf16.mxu1 %v4453_v15  ;;  %v4517_v11 = vpack.c.bf16 %v6362_v12, %v6361_v28 }
 0x350   :  { %4456 = vmatpush3.bf16.msra.mxu1 %v4453_v15  ;;  %v6365_v15 = vld [vmem:[#allocation122_spill] sm:$0xff] }
 0x351   :  { %4458 = vmatprep.subr.bf16.mxu1 %v4457_v40  ;;  %v4525_v14 = vpack.c.bf16 %v6366_v21, %v6365_v15 }
 0x353   :  { %4126 = vmatmul.mubr.msk.f32.vlgmr.msra.gmra.mrb[0].mxu1 %vm663_vm2, %v5811_v46  ;;  %v6339_v46 = vld [vmem:[#allocation72_spill] sm:$0xff] }
 0x354   :  { %4128 = vmatprep.mubr.msk.f32.mxu1 %vm663_vm2, %v5882_v39  ;;  %4460 = vmatpush3.bf16.msra.mxu1 %v4457_v40  ;;  %v6340_v39 = vld [vmem:[#allocation73_spill] sm:$0xff] }
 0x355   :  { %4462 = vmatprep.subr.bf16.mxu1 %v4461_v25  ;;  %v4473_v5 = vpack.c.bf16 %v6340_v39, %v6339_v46 }
 0x357   :  { %4129 = vmatmul.mubr.msk.f32.gmra.mrb[2].mxu1 %vm663_vm2, %v5879_v10  ;;  %v6344_v10 = vld [vmem:[#allocation77_spill] sm:$0xff] }
 0x358   :  { %4464 = vmatpush3.bf16.msra.mxu1 %v4461_v25  ;;  %4147 = vmatprep.mubr.msk.f32.mxu1 %vm663_vm2, %v5821_v18  ;;  %v6343_v18 = vld [vmem:[#allocation76_spill] sm:$0xff]  ;;  %v4533_v25 = vpack.c.bf16 %v6370_v37, %v6369_v30  ;;  %v3189_v37 = vrot.slane %v3125_v52, %v798_v16 }
 0x359   :  { %4466 = vmatprep.subr.bf16.mxu1 %v4465_v45  ;;  %v4481_v26 = vpack.c.bf16 %v6344_v10, %v6343_v18 }
 0x35c   :  { %4468 = vmatpush3.bf16.msra.mxu1 %v4465_v45  ;;  %v3129_v45 = vrot.slane %v3125_v52, %v6371_v35 }
 0x35d   :  { %4470 = vmatprep.subr.bf16.mxu1 %v4469_v61 }
 0x360   :  { %4472 = vmatpush3.bf16.msra.mxu1 %v4469_v61 }
 0x361   :  { %4474 = vmatprep.subr.bf16.mxu1 %v4473_v5 }
 0x363   :  { %4148 = vmatmul.mubr.msk.f32.vlgmr.msra.gmra.mrb[0].mxu1 %vm663_vm2, %v5819_v53  ;;  %v6347_v53 = vld [vmem:[#allocation88_spill] sm:$0xff] }
 0x364   :  { %4150 = vmatprep.mubr.msk.f32.mxu1 %vm663_vm2, %v5888_v19  ;;  %4476 = vmatpush3.bf16.msra.mxu1 %v4473_v5  ;;  %v6348_v19 = vld [vmem:[#allocation89_spill] sm:$0xff] }
 0x365   :  { %4478 = vmatprep.subr.bf16.mxu1 %v4477_v56  ;;  %v4489_v59 = vpack.c.bf16 %v6348_v19, %v6347_v53 }
 0x367   :  { %4151 = vmatmul.mubr.msk.f32.gmra.mrb[2].mxu1 %vm663_vm2, %v5886_v0  ;;  %v6352_v0 = vld [vmem:[#allocation93_spill] sm:$0xff] }
 0x368   :  { %4480 = vmatpush3.bf16.msra.mxu1 %v4477_v56  ;;  %4169 = vmatprep.mubr.msk.f32.mxu1 %vm663_vm2, %v5829_v23  ;;  %v6351_v23 = vld [vmem:[#allocation92_spill] sm:$0xff] }
 0x369   :  { %4482 = vmatprep.subr.bf16.mxu1 %v4481_v26  ;;  %v4497_v7 = vpack.c.bf16 %v6352_v0, %v6351_v23 }
 0x36c   :  { %4484 = vmatpush3.bf16.msra.mxu1 %v4481_v26 }
 0x36d   :  { %4486 = vmatprep.subr.bf16.mxu1 %v4485_v41 }
 0x370   :  { %4488 = vmatpush3.bf16.msra.mxu1 %v4485_v41 }
 0x371   :  { %4490 = vmatprep.subr.bf16.mxu1 %v4489_v59 }
 0x373   :  { %4170 = vmatmul.mubr.msk.f32.vlgmr.msra.gmra.mrb[0].mxu1 %vm663_vm2, %v5827_v49  ;;  %v6355_v49 = vld [vmem:[#allocation104_spill] sm:$0xff] }
 0x374   :  { %4172 = vmatprep.mubr.msk.f32.mxu1 %vm663_vm2, %v5899_v48  ;;  %4492 = vmatpush3.bf16.msra.mxu1 %v4489_v59  ;;  %v6356_v48 = vld [vmem:[#allocation105_spill] sm:$0xff] }
 0x375   :  { %4494 = vmatprep.subr.bf16.mxu1 %v4493_v1  ;;  %v4505_v31 = vpack.c.bf16 %v6356_v48, %v6355_v49 }
 0x377   :  { %4173 = vmatmul.mubr.msk.f32.gmra.mrb[2].mxu1 %vm663_vm2, %v5897_v22  ;;  %v6360_v22 = vld [vmem:[#allocation109_spill] sm:$0xff] }
 0x378   :  { %4496 = vmatpush3.bf16.msra.mxu1 %v4493_v1  ;;  %4191 = vmatprep.mubr.msk.f32.mxu1 %vm663_vm2, %v5839_v6  ;;  %v6359_v6 = vld [vmem:[#allocation108_spill] sm:$0xff] }
 0x379   :  { %4498 = vmatprep.subr.bf16.mxu1 %v4497_v7  ;;  %v4513_v57 = vpack.c.bf16 %v6360_v22, %v6359_v6 }
 0x37c   :  { %4500 = vmatpush3.bf16.msra.mxu1 %v4497_v7 }
 0x37d   :  { %4502 = vmatprep.subr.bf16.mxu1 %v4501_v34 }
 0x380   :  { %4504 = vmatpush3.bf16.msra.mxu1 %v4501_v34 }
 0x381   :  { %4506 = vmatprep.subr.bf16.mxu1 %v4505_v31 }
 0x383   :  { %4192 = vmatmul.mubr.msk.f32.vlgmr.msra.gmra.mrb[0].mxu1 %vm663_vm2, %v5837_v3  ;;  %v6363_v3 = vld [vmem:[#allocation120_spill] sm:$0xff] }
 0x384   :  { %4194 = vmatprep.mubr.msk.f32.mxu1 %vm663_vm2, %v5914_v8  ;;  %4508 = vmatpush3.bf16.msra.mxu1 %v4505_v31  ;;  %v6364_v8 = vld [vmem:[#allocation121_spill] sm:$0xff] }
 0x385   :  { %4510 = vmatprep.subr.bf16.mxu1 %v4509_v13  ;;  %v4521_v42 = vpack.c.bf16 %v6364_v8, %v6363_v3 }
 0x387   :  { %4195 = vmatmul.mubr.msk.f32.gmra.mrb[2].mxu1 %vm663_vm2, %v5910_v20  ;;  %v6368_v20 = vld [vmem:[#allocation125_spill] sm:$0xff] }
 0x388   :  { %4512 = vmatpush3.bf16.msra.mxu1 %v4509_v13  ;;  %4213 = vmatprep.mubr.msk.f32.mxu1 %vm663_vm2, %v5847_v32  ;;  %v6367_v32 = vld [vmem:[#allocation124_spill] sm:$0xff] }
 0x389   :  { %4514 = vmatprep.subr.bf16.mxu1 %v4513_v57  ;;  %v4529_v40 = vpack.c.bf16 %v6368_v20, %v6367_v32 }
 0x38c   :  { %4516 = vmatpush3.bf16.msra.mxu1 %v4513_v57 }
 0x38d   :  { %4518 = vmatprep.subr.bf16.mxu1 %v4517_v11 }
 0x390   :  { %4520 = vmatpush3.bf16.msra.mxu1 %v4517_v11 }
 0x391   :  { %4522 = vmatprep.subr.bf16.mxu1 %v4521_v42 }
 0x393   :  { %4214 = vmatmul.mubr.msk.f32.vlgmr.msra.gmra.mrb[0].mxu1 %vm663_vm2, %v5845_v55 }
 0x394   :  { %4216 = vmatprep.mubr.msk.f32.mxu1 %vm663_vm2, %v5922_v29  ;;  %4524 = vmatpush3.bf16.msra.mxu1 %v4521_v42 }
 0x395   :  { %4526 = vmatprep.subr.bf16.mxu1 %v4525_v14 }
 0x397   :  { %4217 = vmatmul.mubr.msk.f32.gmra.mrb[2].mxu1 %vm663_vm2, %v5918_v58 }
 0x398   :  { %4528 = vmatpush3.bf16.msra.mxu1 %v4525_v14  ;;  %4235 = vmatprep.mubr.msk.f32.mxu1 %vm663_vm2, %v5855_v50 }
 0x399   :  { %4530 = vmatprep.subr.bf16.mxu1 %v4529_v40 }
 0x39c   :  { %4532 = vmatpush3.bf16.msra.mxu1 %v4529_v40 }
 0x39d   :  { %4534 = vmatprep.subr.bf16.mxu1 %v4533_v25 }
 0x3a0   :  { %4536 = vmatpush3.bf16.msra.mxu1 %v4533_v25 }
 0x3a3   :  { %4236 = vmatmul.mubr.msk.f32.vlgmr.msra.gmra.mrb[0].mxu1 %vm663_vm2, %v5853_v54 }
 0x3a4   :  { %4238 = vmatprep.mubr.msk.f32.mxu1 %vm663_vm2, %v5936_v24 }
 0x3a7   :  { %4239 = vmatmul.mubr.msk.f32.gmra.mrb[2].mxu1 %vm663_vm2, %v5932_v17 }
 0x3be   :  { %v3951_v55 = vpop.f32.mrb[80].mxu0 }
 0x3bf   :  { %v1737_v58 = vpop.f32.mrb[81].mxu0 }
 0x3c2   :  { %v3954_v29 = vpop.f32.mrb[82].mxu0 }
 0x3c3   :  { %v1747_v50 = vpop.f32.mrb[83].mxu0 }
 0x476   :  { %v4237_v9 = vpop.f32.mrb[0].mxu1 }
 0x477   :  { %v4537_v4 = vadd.f32 %v4237_v9, %v3951_v55  ;;  %v3078_v54 = vpop.f32.mrb[1].mxu1 }
 0x478   :  { %v4538_v61 = vadd.f32 %v3078_v54, %v1737_v58 }
 0x479   :  { %v3131_v46 = vadd.f32 %v4537_v4, %v3129_v45 }
 0x47a   :  { %v3130_v24 = vadd.f32 %v4538_v61, %v3129_v45  ;;  %v4240_v39 = vpop.f32.mrb[2].mxu1 }
 0x47b   :  { %vm3135_vm3 = vcmp.gt.f32.partialorder %v3131_v46, 0.0  ;;  %v3139_v17 = vmul.f32 0.2, %v3131_v46  ;;  %v4539_v5 = vadd.f32 %v4240_v39, %v3954_v29  ;;  %v3088_v47 = vpop.f32.mrb[3].mxu1 }
 0x47c   :  { %vm3134_vm2 = vcmp.gt.f32.partialorder %v3130_v24, 0.0  ;;  %v3138_v51 = vmul.f32 0.2, %v3130_v24  ;;  %v4540_v56 = vadd.f32 %v3088_v47, %v1747_v50  ;;  %v3194_v50 = vld [vmem:[%s6111_s6] sm:$0xff] }
 0x47d   :  { %v3143_v18 = vsel %vm3135_vm3, %v3131_v46, %v3139_v17  ;;  %v3133_v10 = vadd.f32 %v4539_v5, %v3129_v45  ;;  %v6372_v46 = vlaneseq }
 0x47e   :  { %v3142_v26 = vsel %vm3134_vm2, %v3130_v24, %v3138_v51  ;;  %v3132_v60 = vadd.f32 %v4540_v56, %v3129_v45 }
 0x47f   :  { %v3146_v33 = vadd.f32 %v3143_v18, %v3142_v26  ;;  %v3141_v41 = vmul.f32 0.2, %v3133_v10  ;;  %vm3137_vm5 = vcmp.gt.f32.partialorder %v3133_v10, 0.0  ;;  %v3213_v24 = vand.u32 127, %v6372_v46 }
 0x480   :  { %vm3136_vm4 = vcmp.gt.f32.partialorder %v3132_v60, 0.0  ;;  %v3140_v53 = vmul.f32 0.2, %v3132_v60 }
 0x481   :  { %v3145_v43 = vsel %vm3137_vm5, %v3133_v10, %v3141_v41  ;;  %v3218_v39 = vadd.s32 4294967288, %v3213_v24  ;;  %v3216_v47 = vsub.s32 %v3213_v24, %v5454_v38 }
 0x482   :  { %v3144_v19 = vsel %vm3136_vm4, %v3132_v60, %v3140_v53 }
 0x483   :  { %v3147_v59 = vadd.f32 %v3146_v33, %v3144_v19  ;;  %v3221_v51 = vsub.s32 %v3218_v39, %v5454_v38 }
 0x485   :  { %v3148_v2 = vadd.f32 %v3147_v59, %v3145_v43 }
 0x487   :  { %v3149_v1 = vrot.slane %v3148_v2, 4 }
 0x489   :  { %v3150_v23 = vadd.f32 %v3149_v1, %v3148_v2 }
 0x48b   :  { %v3151_v0 = vrot.slane %v3150_v23, 2 }
 0x48d   :  { %v3152_v7 = vadd.f32 %v3151_v0, %v3150_v23 }
 0x48f   :  { %v3153_v62 = vrot.slane %v3152_v7, 1 }
 0x491   :  { %v3154_v44 = vadd.f32 %v3153_v62, %v3152_v7 }
 0x493   :  { %v3156_v34 = vmul.f32 0.03125, %v3154_v44 }
 0x495   :  { %v3157_v49 = vsub.f32 %v3142_v26, %v3156_v34  ;;  %v3158_v48 = vsub.f32 %v3143_v18, %v3156_v34  ;;  %v3159_v31 = vsub.f32 %v3144_v19, %v3156_v34  ;;  %v3160_v27 = vsub.f32 %v3145_v43, %v3156_v34  ;;  %v3434_v43 = vld [vmem:[#allocation5] ss:$0 sm:$0xff] }
 0x497   :  { %v3161_v63 = vmul.f32 %v3157_v49, %v3157_v49  ;;  %v3162_v13 = vmul.f32 %v3158_v48, %v3158_v48  ;;  %v3163_v6 = vmul.f32 %v3159_v31, %v3159_v31  ;;  %v3164_v57 = vmul.f32 %v3160_v27, %v3160_v27 }
 0x499   :  { %v3165_v22 = vadd.f32 %v3162_v13, %v3161_v63 }
 0x49b   :  { %v3166_v28 = vadd.f32 %v3165_v22, %v3163_v6 }
 0x49d   :  { %v3167_v12 = vadd.f32 %v3166_v28, %v3164_v57 }
 0x49f   :  { %v3168_v11 = vrot.slane %v3167_v12, 4 }
 0x4a1   :  { %v3169_v3 = vadd.f32 %v3168_v11, %v3167_v12 }
 0x4a3   :  { %v3170_v8 = vrot.slane %v3169_v3, 2 }
 0x4a5   :  { %v3171_v42 = vadd.f32 %v3170_v8, %v3169_v3 }
 0x4a7   :  { %v3172_v15 = vrot.slane %v3171_v42, 1 }
 0x4a9   :  { %v3173_v21 = vadd.f32 %v3172_v15, %v3171_v42 }
 0x4ab   :  { %v3174_v14 = vmul.f32 0.03125, %v3173_v21 }
 0x4ad   :  { %v3175_v32 = vadd.f32 1e-05, %v3174_v14 }
 0x4af   :  { %4599 = vrsqrt.f32 %v3175_v32 }
 0x4b9   :  { %v4600_v20 = vpop.eup %4599 }
 0x4ba   :  { %v3177_v40 = vmul.f32 %v4600_v20, %v3125_v52 }
 0x4bc   :  { %v3181_v30 = vrot.slane %v3177_v40, %v778_v36  ;;  %v3195_v36 = vld [vmem:[%s6111_s6 + $0x8] sm:$0xff] }
 0x4be   :  { %v3184_v25 = vmul.f32 %v3181_v30, %v3159_v31  ;;  %v3182_v55 = vmul.f32 %v3181_v30, %v3157_v49  ;;  %v3185_v58 = vmul.f32 %v3181_v30, %v3160_v27  ;;  %v3183_v29 = vmul.f32 %v3181_v30, %v3158_v48 }
 0x4c0   :  { %v3192_v35 = vadd.f32 %v3189_v37, %v3184_v25  ;;  %v3190_v45 = vadd.f32 %v3189_v37, %v3182_v55  ;;  %v3193_v54 = vadd.f32 %v3189_v37, %v3185_v58  ;;  %v3191_v61 = vadd.f32 %v3189_v37, %v3183_v29 }
 0x4c2   :  { %v3198_v9 = vmul.f32 %v3194_v50, %v3192_v35  ;;  %v3196_v4 = vmul.f32 %v3194_v50, %v3190_v45  ;;  %v3199_v16 = vmul.f32 %v3195_v36, %v3193_v54  ;;  %v3197_v52 = vmul.f32 %v3195_v36, %v3191_v61 }
 0x4c4   :  { %3204 = vadd.xlane.f32.xlu1 %v3198_v9  ;;  %3200 = vadd.xlane.f32.xlu0 %v3196_v4 }
 0x4c8   :  { %3206 = vadd.xlane.f32.xlu1 %v3199_v16  ;;  %3202 = vadd.xlane.f32.xlu0 %v3197_v52 }
 0x551   :  { %v3205_v17 = vpop.xlane.xlu1 %3204  ;;  %v3201_v5 = vpop.xlane.xlu0 %3200 }
 0x552   :  { %v3228_v10 = vrot.slane %v3205_v17, %v3216_v47  ;;  %v3217_v26 = vrot.slane %v3201_v5, %v3216_v47 }
 0x555   :  { %v3207_v56 = vpop.xlane.xlu1 %3206  ;;  %v3203_v18 = vpop.xlane.xlu0 %3202 }
 0x556   :  { %v3232_v60 = vrot.slane %v3207_v56, %v3221_v51  ;;  %v3222_v33 = vrot.slane %v3203_v18, %v3221_v51 }
 0x558   :  { %v3224_v41 = vsel %vm3223_vm6, %v3222_v33, %v3217_v26  ;;  %v3233_v53 = vsel %vm3223_vm6, %v3232_v60, %v3228_v10 }
 0x559   :  { %v3235_v19 = vsel %vm3234_vm7, %v3233_v53, %v3224_v41 }
 0x55a   :  { %v3238_v59 = vsel %vm3237_vm8, %v3235_v19, 0.0 }
 0x55b   :  { %3239 = vadd.xlane.f32.xlu0 %v3238_v59 }
 0x5e8   :  { %v3240_v2 = vpop.xlane.xlu0 %3239 }
 0x5e9   :  { %v3248_v1 = vadd.f32 %v3434_v43, %v3240_v2 }
 0x5eb   :  { %v3249_v23 = vsub.f32 0.0, %v3248_v1 }
 0x5ed   :  { %v3250_v0 = vmul.f32 1.442695, %v3249_v23 }
 0x5ef   :  { %4601 = vpow2.f32 %v3250_v0 }
 0x5f9   :  { %v4602_v38 = vpop.eup %4601 }
 0x5fa   :  { %v3252_v7 = vadd.f32 1.0, %v4602_v38 }
 0x5fc   :  { %4603 = vrcp.f32 %v3252_v7 }
 0x606   :  { %v4604_v62 = vpop.eup %4603 }
 0x607   :  { %3256 = vst.msk [vmem:[%s6113_s8] sm:$0x3] %vm3255_vm9, %v4604_v62 }
 0x608   :  { %3261 = vsyncmov [#allocation4] }
 0x60b   :  { %s3262_s12 = vpop.sfrf %3261 }
 0x60c   :  { %p3435_p0 = scmp.ne.s32.totalorder %s3262_s12, 0 }
 0x60e   :  { %3266 = shalt.err (%p3435_p0)  }
 0x60f   :  { %3268 = vsyncmov [#allocation4 + $0x1] }
 0x612   :  { %s3269_s13 = vpop.sfrf %3268 }
 0x613   :  { %p3436_p1 = scmp.ne.s32.totalorder %s3269_s13, 0 }
 0x615   :  { %3273 = shalt.err (%p3436_p1)  }

</bundles_post_ra>
